<compile_context>
chip_gen: v6e
topology: v6e:2x2x1
jax: 0.10.0
libtpu: 0.0.40
codegen_flags: <defaults>
</compile_context>

<pallas_src>
import functools

import jax
import jax.numpy as jnp
from jax import lax
from jax.experimental import pallas as pl
from jax.experimental.pallas import tpu as pltpu


# ---------------------------------------------------------------------------
# Fused Pallas kernel: all LSTM layers, grid axis = layer index (sequential).
# ---------------------------------------------------------------------------
def _fused_lstm_kernel(xproj0_ref,      # (T, B, 4H)  layer-0 input projection (embed folded)
                       w_ih_ref,        # (1, H, 4H)  layer-l input weights (dummy at l==0)
                       w_hh_ref,        # (1, H, 4H)  layer-l recurrent weights
                       b_ref,           # (1, 1, 4H)  layer-l bias (dummy at l==0)
                       y_ref,           # (T, B, H)   resident output / inter-layer activations
                       hT_ref,          # (1, B, H)   final h of layer l
                       cT_ref,          # (1, B, H)   final c of layer l
                       gx_scr):         # (T, B, 4H)  VMEM scratch: per-layer input gates
    layer = pl.program_id(0)
    T, B, G = gx_scr.shape
    H = G // 4

    # ---- Stage the input projection as ONE big matmul (off the serial chain).
    @pl.when(layer == 0)
    def _():
        # Layer 0: embedding + W_ih[0] + bias already folded by the wrapper.
        gx_scr[...] = xproj0_ref[...]

    @pl.when(layer > 0)
    def _():
        # Previous layer's full output sequence is resident in y_ref.
        y_flat = y_ref[...].reshape(T * B, H)                        # (T*B, H)
        gx = jnp.dot(y_flat, w_ih_ref[0],
                     preferred_element_type=jnp.float32)             # (T*B, 4H) on MXU
        gx = gx + b_ref[0]                                           # bias once per layer
        gx_scr[...] = gx.reshape(T, B, G)

    # ---- Serial recurrence: only h @ W_hh + elementwise gates per step.
    def step(t, carry):
        h, c = carry
        gates = gx_scr[t] + jnp.dot(h, w_hh_ref[0],
                                    preferred_element_type=jnp.float32)  # (B, 4H)
        i_g = jax.nn.sigmoid(gates[:, 0 * H:1 * H])
        f_g = jax.nn.sigmoid(gates[:, 1 * H:2 * H])
        g_g = jnp.tanh(gates[:, 2 * H:3 * H])
        o_g = jax.nn.sigmoid(gates[:, 3 * H:4 * H])
        c_new = f_g * c + i_g * g_g
        h_new = o_g * jnp.tanh(c_new)
        y_ref[t] = h_new                      # timestep output == next layer's input
        return (h_new, c_new)

    h0 = jnp.zeros((B, H), jnp.float32)
    c0 = jnp.zeros((B, H), jnp.float32)
    hT, cT = lax.fori_loop(0, T, step, (h0, c0), unroll=True)

    hT_ref[0] = hT
    cT_ref[0] = cT


def fused_lstm_pallas(xproj0, w_ih_stack, w_hh_stack, b_stack):
    """All LSTM layers in one pallas_call.

    xproj0:     (T, B, 4H) f32 -- layer-0 input projection (embedding + W_ih[0] + b[0] folded)
    w_ih_stack: (L, H, 4H) f32 -- slot 0 is an unused dummy (layer-0 projection is prefolded)
    w_hh_stack: (L, H, 4H) f32
    b_stack:    (L, 1, 4H) f32
    Returns (y (T,B,H), h_out (L,B,H), c_out (L,B,H)).
    """
    T, B, G = xproj0.shape
    H = G // 4
    L = w_hh_stack.shape[0]
    assert w_ih_stack.shape == (L, H, G)
    assert b_stack.shape == (L, 1, G)

    grid_spec = pltpu.PrefetchScalarGridSpec(
        num_scalar_prefetch=0,
        grid=(L,),
        in_specs=[
            pl.BlockSpec((T, B, G), lambda l: (0, 0, 0)),   # xproj0 (resident)
            pl.BlockSpec((1, H, G), lambda l: (l, 0, 0)),   # W_ih of layer l (pipelined)
            pl.BlockSpec((1, H, G), lambda l: (l, 0, 0)),   # W_hh of layer l (pipelined)
            pl.BlockSpec((1, 1, G), lambda l: (l, 0, 0)),   # bias of layer l
        ],
        out_specs=[
            pl.BlockSpec((T, B, H), lambda l: (0, 0, 0)),   # y: resident across layers
            pl.BlockSpec((1, B, H), lambda l: (l, 0, 0)),   # h_T per layer
            pl.BlockSpec((1, B, H), lambda l: (l, 0, 0)),   # c_T per layer
        ],
        scratch_shapes=[
            pltpu.VMEM((T, B, G), jnp.float32),             # per-layer input-gate stash
        ],
    )

    out_shape = (
        jax.ShapeDtypeStruct((T, B, H), jnp.float32),
        jax.ShapeDtypeStruct((L, B, H), jnp.float32),
        jax.ShapeDtypeStruct((L, B, H), jnp.float32),
    )

    return pl.pallas_call(
        _fused_lstm_kernel,
        out_shape=out_shape,
        grid_spec=grid_spec,
        compiler_params=pltpu.CompilerParams(
            dimension_semantics=("arbitrary",)),            # layers are sequential
    )(xproj0, w_ih_stack, w_hh_stack, b_stack)


# ---------------------------------------------------------------------------
# EncoderRNN forward (embedding fold + layout are XLA glue; LSTM stack is Pallas).
# ---------------------------------------------------------------------------
@functools.partial(jax.jit, static_argnames=("n_layers",))
def encoder_rnn_forward(tokens, params, n_layers):
    """tokens: (B, T) int32.  Returns (output (B,T,H), (h_out, c_out) each (L,B,H))."""
    H = params["w_hh"][0].shape[0]

    # Fold embedding + layer-0 input projection + layer-0 bias into one small table,
    # then gather rows by token id (handles d_emb != d_hid automatically).
    eproj = params["embed"] @ params["w_ih"][0] + params["b"][0]      # (voc, 4H)
    xproj0 = eproj[tokens]                                             # (B, T, 4H)
    xproj0 = jnp.transpose(xproj0, (1, 0, 2)).astype(jnp.float32)      # (T, B, 4H) time-major

    # Stack per-layer weights for the layer grid.  Slot 0 of W_ih is unused.
    w_ih_stack = jnp.stack(
        [jnp.zeros((H, 4 * H), jnp.float32)]
        + [params["w_ih"][l] for l in range(1, n_layers)], axis=0)     # (L, H, 4H)
    w_hh_stack = jnp.stack(params["w_hh"], axis=0)                     # (L, H, 4H)
    b_stack = jnp.stack(params["b"], axis=0)                           # (L, 1, 4H)

    y, h_out, c_out = fused_lstm_pallas(xproj0, w_ih_stack, w_hh_stack, b_stack)

    output = jnp.transpose(y, (1, 0, 2))                               # (B, T, H) batch-first
    return output, (h_out, c_out)


# ---------------------------------------------------------------------------
# Pure-JAX reference (correctness check).
# ---------------------------------------------------------------------------
def _ref_lstm_layer(x_tbd, w_ih, w_hh, b):
    H = w_hh.shape[0]

    def step(carry, xt):
        h, c = carry
        gates = xt @ w_ih + h @ w_hh + b
        i = jax.nn.sigmoid(gates[:, 0 * H:1 * H])
        f = jax.nn.sigmoid(gates[:, 1 * H:2 * H])
        g = jnp.tanh(gates[:, 2 * H:3 * H])
        o = jax.nn.sigmoid(gates[:, 3 * H:4 * H])
        c = f * c + i * g
        h = o * jnp.tanh(c)
        return (h, c), h

    B = x_tbd.shape[1]
    init = (jnp.zeros((B, H), jnp.float32), jnp.zeros((B, H), jnp.float32))
    (h, c), ys = lax.scan(step, init, x_tbd)
    return ys, h, c


def encoder_rnn_reference(tokens, params, n_layers):
    emb = params["embed"][tokens]
    x = jnp.transpose(emb, (1, 0, 2)).astype(jnp.float32)
    h_list, c_list = [], []
    for l in range(n_layers):
        x, h, c = _ref_lstm_layer(x, params["w_ih"][l], params["w_hh"][l],
                                  params["b"][l])
        h_list.append(h)
        c_list.append(c)
    return (jnp.transpose(x, (1, 0, 2)),
            (jnp.stack(h_list, 0), jnp.stack(c_list, 0)))


# ---------------------------------------------------------------------------
# Deterministic parameter init (shapes match nn.Embedding + nn.LSTM).
# ---------------------------------------------------------------------------
def init_params(key, voc_size, d_emb, d_hid, n_layers):
    keys = jax.random.split(key, 1 + 3 * n_layers)
    embed = jax.random.normal(keys[0], (voc_size, d_emb), jnp.float32)

    w_ih, w_hh, bias = [], [], []
    bound = 1.0 / jnp.sqrt(d_hid)
    for l in range(n_layers):
        d_in = d_emb if l == 0 else d_hid
        k1, k2, k3 = keys[1 + 3 * l: 4 + 3 * l]
        # stored transposed relative to PyTorch: (d_in, 4H) / (H, 4H)
        w_ih.append(jax.random.uniform(k1, (d_in, 4 * d_hid), jnp.float32,
                                       -bound, bound))
        w_hh.append(jax.random.uniform(k2, (d_hid, 4 * d_hid), jnp.float32,
                                       -bound, bound))
        # b_ih + b_hh folded into a single (1, 4H) bias
        bias.append(jax.random.uniform(k3, (1, 4 * d_hid), jnp.float32,
                                       -bound, bound))
    return {"embed": embed, "w_ih": w_ih, "w_hh": w_hh, "b": bias}


if __name__ == "__main__":
    # Small shapes consistent with the module (d_emb != d_hid, like the real config).
    VOC, D_EMB, D_HID, N_LAYERS = 32, 64, 128, 3
    B, T = 8, 8

    key = jax.random.PRNGKey(0)
    k_tok, k_par = jax.random.split(key)
    tokens = jax.random.randint(k_tok, (B, T), 0, VOC, dtype=jnp.int32)
    params = init_params(k_par, VOC, D_EMB, D_HID, N_LAYERS)

    out, (h_out, c_out) = encoder_rnn_forward(tokens, params, N_LAYERS)
    jax.block_until_ready((out, h_out, c_out))

    ref_out, (ref_h, ref_c) = encoder_rnn_reference(tokens, params, N_LAYERS)
    assert out.shape == (B, T, D_HID)
    assert h_out.shape == (N_LAYERS, B, D_HID)
    assert c_out.shape == (N_LAYERS, B, D_HID)
    assert jnp.allclose(out, ref_out, rtol=1e-4, atol=1e-4)
    assert jnp.allclose(h_out, ref_h, rtol=1e-4, atol=1e-4)
    assert jnp.allclose(c_out, ref_c, rtol=1e-4, atol=1e-4)

    print("KERNEL_OK")
</pallas_src>

<mosaic_0001>
module attributes {stable_mosaic.version = 11 : i64} {
  func.func @_fused_lstm_kernel(%arg0: i32, %arg1: memref<8x8x512xf32, #tpu.memory_space<vmem>>, %arg2: memref<1x128x512xf32, #tpu.memory_space<vmem>>, %arg3: memref<1x128x512xf32, #tpu.memory_space<vmem>>, %arg4: memref<1x1x512xf32, #tpu.memory_space<vmem>>, %arg5: memref<8x8x128xf32, #tpu.memory_space<vmem>>, %arg6: memref<1x8x128xf32, #tpu.memory_space<vmem>>, %arg7: memref<1x8x128xf32, #tpu.memory_space<vmem>>, %arg8: memref<8x8x512xf32, #tpu.memory_space<vmem>>) attributes {dimension_semantics = [#tpu.dimension_semantics<arbitrary>], iteration_bounds = array<i64: 3>, scalar_prefetch = 0 : i64, scratch_operands = 1 : i64, tpu.core_type = #tpu.core_type<tc>, window_params = [{pipeline_mode = #tpu.pipeline_mode<synchronous>, transform_indices = @transform_0, window_bounds = array<i64: 8, 8, 512>}, {transform_indices = @transform_1, window_bounds = array<i64: 1, 128, 512>}, {transform_indices = @transform_2, window_bounds = array<i64: 1, 128, 512>}, {transform_indices = @transform_3, window_bounds = array<i64: 1, 1, 512>}, {pipeline_mode = #tpu.pipeline_mode<synchronous>, transform_indices = @transform_4, window_bounds = array<i64: 8, 8, 128>}, {transform_indices = @transform_5, window_bounds = array<i64: 1, 8, 128>}, {transform_indices = @transform_6, window_bounds = array<i64: 1, 8, 128>}]} {
    %c0_i32 = arith.constant 0 : i32
    %0 = arith.cmpi eq, %arg0, %c0_i32 : i32
    %1 = arith.extui %0 : i1 to i32
    %c0_i32_0 = arith.constant 0 : i32
    %2 = arith.cmpi ne, %1, %c0_i32_0 : i32
    scf.if %2 {
      %c0_98 = arith.constant 0 : index
      %c0_99 = arith.constant 0 : index
      %c0_100 = arith.constant 0 : index
      %302 = vector.load %arg1[%c0_98, %c0_99, %c0_100] : memref<8x8x512xf32, #tpu.memory_space<vmem>>, vector<8x8x512xf32>
      %c0_101 = arith.constant 0 : index
      %c0_102 = arith.constant 0 : index
      %c0_103 = arith.constant 0 : index
      %303 = vector.load %arg8[%c0_101, %c0_102, %c0_103] : memref<8x8x512xf32, #tpu.memory_space<vmem>>, vector<8x8x512xf32>
      tpu.vector_store %arg8[%c0_101, %c0_102, %c0_103], %302 {strides = array<i32>} : memref<8x8x512xf32, #tpu.memory_space<vmem>>, vector<8x8x512xf32>,
    } else {
    }
    %c0_i32_1 = arith.constant 0 : i32
    %3 = arith.cmpi sgt, %arg0, %c0_i32_1 : i32
    %4 = arith.extui %3 : i1 to i32
    %c0_i32_2 = arith.constant 0 : i32
    %5 = arith.cmpi ne, %4, %c0_i32_2 : i32
    scf.if %5 {
      %c0_98 = arith.constant 0 : index
      %c0_99 = arith.constant 0 : index
      %c0_100 = arith.constant 0 : index
      %302 = vector.load %arg5[%c0_98, %c0_99, %c0_100] : memref<8x8x128xf32, #tpu.memory_space<vmem>>, vector<8x8x128xf32>
      %303 = vector.shape_cast %302 : vector<8x8x128xf32> to vector<64x128xf32>
      %c0_101 = arith.constant 0 : index
      %c0_102 = arith.constant 0 : index
      %c0_103 = arith.constant 0 : index
      %304 = vector.load %arg2[%c0_101, %c0_102, %c0_103] : memref<1x128x512xf32, #tpu.memory_space<vmem>>, vector<1x128x512xf32>
      %305 = vector.shape_cast %304 : vector<1x128x512xf32> to vector<128x512xf32>
      %cst_104 = arith.constant dense<0.000000e+00> : vector<64x512xf32>
      %306 = tpu.matmul %303, %305, %cst_104 {dimension_numbers = #tpu.dot_dimension_numbers<[1], [0], [0], [1], [0, 0, 1, 1], [], []>} : vector<64x128xf32>, vector<128x512xf32>, vector<64x512xf32> -> vector<64x512xf32>
      %c0_105 = arith.constant 0 : index
      %c0_106 = arith.constant 0 : index
      %c0_107 = arith.constant 0 : index
      %307 = vector.load %arg4[%c0_105, %c0_106, %c0_107] : memref<1x1x512xf32, #tpu.memory_space<vmem>>, vector<1x1x512xf32>
      %308 = vector.shape_cast %307 : vector<1x1x512xf32> to vector<1x512xf32>
      %309 = vector.broadcast %308 : vector<1x512xf32> to vector<64x512xf32>
      %310 = arith.addf %306, %309 : vector<64x512xf32>
      %311 = vector.shape_cast %310 : vector<64x512xf32> to vector<8x8x512xf32>
      %c0_108 = arith.constant 0 : index
      %c0_109 = arith.constant 0 : index
      %c0_110 = arith.constant 0 : index
      %312 = vector.load %arg8[%c0_108, %c0_109, %c0_110] : memref<8x8x512xf32, #tpu.memory_space<vmem>>, vector<8x8x512xf32>
      tpu.vector_store %arg8[%c0_108, %c0_109, %c0_110], %311 {strides = array<i32>} : memref<8x8x512xf32, #tpu.memory_space<vmem>>, vector<8x8x512xf32>,
    } else {
    }
    %cst = arith.constant 0.000000e+00 : f32
    %6 = vector.broadcast %cst : f32 to vector<8x128xf32>
    %cst_3 = arith.constant 0.000000e+00 : f32
    %7 = vector.broadcast %cst_3 : f32 to vector<8x128xf32>
    %c0_i32_4 = arith.constant 0 : i32
    %8 = arith.index_cast %c0_i32_4 : i32 to index
    %c0 = arith.constant 0 : index
    %c0_5 = arith.constant 0 : index
    %9 = vector.load %arg8[%8, %c0, %c0_5] : memref<8x8x512xf32, #tpu.memory_space<vmem>>, vector<1x8x512xf32>
    %10 = vector.shape_cast %9 : vector<1x8x512xf32> to vector<8x512xf32>
    %c0_6 = arith.constant 0 : index
    %c0_7 = arith.constant 0 : index
    %c0_8 = arith.constant 0 : index
    %11 = vector.load %arg3[%c0_6, %c0_7, %c0_8] : memref<1x128x512xf32, #tpu.memory_space<vmem>>, vector<1x128x512xf32>
    %12 = vector.shape_cast %11 : vector<1x128x512xf32> to vector<128x512xf32>
    %cst_9 = arith.constant dense<0.000000e+00> : vector<8x512xf32>
    %13 = tpu.matmul %6, %12, %cst_9 {dimension_numbers = #tpu.dot_dimension_numbers<[1], [0], [0], [1], [0, 0, 1, 1], [], []>} : vector<8x128xf32>, vector<128x512xf32>, vector<8x512xf32> -> vector<8x512xf32>
    %14 = arith.addf %10, %13 : vector<8x512xf32>
    %15 = vector.extract_strided_slice %14 {offsets = [0, 0], sizes = [8, 128], strides = [1, 1]} : vector<8x512xf32> to vector<8x128xf32>
    %16 = arith.negf %15 : vector<8x128xf32>
    %17 = math.exp %16 : vector<8x128xf32>
    %cst_10 = arith.constant 1.000000e+00 : f32
    %18 = vector.broadcast %cst_10 : f32 to vector<8x128xf32>
    %19 = arith.addf %18, %17 : vector<8x128xf32>
    %20 = arith.divf %18, %19 : vector<8x128xf32>
    %21 = vector.extract_strided_slice %14 {offsets = [0, 128], sizes = [8, 128], strides = [1, 1]} : vector<8x512xf32> to vector<8x128xf32>
    %22 = arith.negf %21 : vector<8x128xf32>
    %23 = math.exp %22 : vector<8x128xf32>
    %cst_11 = arith.constant 1.000000e+00 : f32
    %24 = vector.broadcast %cst_11 : f32 to vector<8x128xf32>
    %25 = arith.addf %24, %23 : vector<8x128xf32>
    %26 = arith.divf %24, %25 : vector<8x128xf32>
    %27 = vector.extract_strided_slice %14 {offsets = [0, 256], sizes = [8, 128], strides = [1, 1]} : vector<8x512xf32> to vector<8x128xf32>
    %28 = math.tanh %27 : vector<8x128xf32>
    %29 = vector.extract_strided_slice %14 {offsets = [0, 384], sizes = [8, 128], strides = [1, 1]} : vector<8x512xf32> to vector<8x128xf32>
    %30 = arith.negf %29 : vector<8x128xf32>
    %31 = math.exp %30 : vector<8x128xf32>
    %cst_12 = arith.constant 1.000000e+00 : f32
    %32 = vector.broadcast %cst_12 : f32 to vector<8x128xf32>
    %33 = arith.addf %32, %31 : vector<8x128xf32>
    %34 = arith.divf %32, %33 : vector<8x128xf32>
    %35 = arith.mulf %26, %7 : vector<8x128xf32>
    %36 = arith.mulf %20, %28 : vector<8x128xf32>
    %37 = arith.addf %35, %36 : vector<8x128xf32>
    %38 = math.tanh %37 : vector<8x128xf32>
    %39 = arith.mulf %34, %38 : vector<8x128xf32>
    %40 = arith.index_cast %c0_i32_4 : i32 to index
    %c0_13 = arith.constant 0 : index
    %c0_14 = arith.constant 0 : index
    %41 = vector.load %arg5[%40, %c0_13, %c0_14] : memref<8x8x128xf32, #tpu.memory_space<vmem>>, vector<1x8x128xf32>
    %42 = vector.shape_cast %41 : vector<1x8x128xf32> to vector<8x128xf32>
    %43 = vector.shape_cast %39 : vector<8x128xf32> to vector<1x8x128xf32>
    tpu.vector_store %arg5[%40, %c0_13, %c0_14], %43 {strides = array<i32>} : memref<8x8x128xf32, #tpu.memory_space<vmem>>, vector<1x8x128xf32>,
    %c1_i32 = arith.constant 1 : i32
    %44 = arith.index_cast %c1_i32 : i32 to index
    %c0_15 = arith.constant 0 : index
    %c0_16 = arith.constant 0 : index
    %45 = vector.load %arg8[%44, %c0_15, %c0_16] : memref<8x8x512xf32, #tpu.memory_space<vmem>>, vector<1x8x512xf32>
    %46 = vector.shape_cast %45 : vector<1x8x512xf32> to vector<8x512xf32>
    %c0_17 = arith.constant 0 : index
    %c0_18 = arith.constant 0 : index
    %c0_19 = arith.constant 0 : index
    %47 = vector.load %arg3[%c0_17, %c0_18, %c0_19] : memref<1x128x512xf32, #tpu.memory_space<vmem>>, vector<1x128x512xf32>
    %48 = vector.shape_cast %47 : vector<1x128x512xf32> to vector<128x512xf32>
    %cst_20 = arith.constant dense<0.000000e+00> : vector<8x512xf32>
    %49 = tpu.matmul %39, %48, %cst_20 {dimension_numbers = #tpu.dot_dimension_numbers<[1], [0], [0], [1], [0, 0, 1, 1], [], []>} : vector<8x128xf32>, vector<128x512xf32>, vector<8x512xf32> -> vector<8x512xf32>
    %50 = arith.addf %46, %49 : vector<8x512xf32>
    %51 = vector.extract_strided_slice %50 {offsets = [0, 0], sizes = [8, 128], strides = [1, 1]} : vector<8x512xf32> to vector<8x128xf32>
    %52 = arith.negf %51 : vector<8x128xf32>
    %53 = math.exp %52 : vector<8x128xf32>
    %cst_21 = arith.constant 1.000000e+00 : f32
    %54 = vector.broadcast %cst_21 : f32 to vector<8x128xf32>
    %55 = arith.addf %54, %53 : vector<8x128xf32>
    %56 = arith.divf %54, %55 : vector<8x128xf32>
    %57 = vector.extract_strided_slice %50 {offsets = [0, 128], sizes = [8, 128], strides = [1, 1]} : vector<8x512xf32> to vector<8x128xf32>
    %58 = arith.negf %57 : vector<8x128xf32>
    %59 = math.exp %58 : vector<8x128xf32>
    %cst_22 = arith.constant 1.000000e+00 : f32
    %60 = vector.broadcast %cst_22 : f32 to vector<8x128xf32>
    %61 = arith.addf %60, %59 : vector<8x128xf32>
    %62 = arith.divf %60, %61 : vector<8x128xf32>
    %63 = vector.extract_strided_slice %50 {offsets = [0, 256], sizes = [8, 128], strides = [1, 1]} : vector<8x512xf32> to vector<8x128xf32>
    %64 = math.tanh %63 : vector<8x128xf32>
    %65 = vector.extract_strided_slice %50 {offsets = [0, 384], sizes = [8, 128], strides = [1, 1]} : vector<8x512xf32> to vector<8x128xf32>
    %66 = arith.negf %65 : vector<8x128xf32>
    %67 = math.exp %66 : vector<8x128xf32>
    %cst_23 = arith.constant 1.000000e+00 : f32
    %68 = vector.broadcast %cst_23 : f32 to vector<8x128xf32>
    %69 = arith.addf %68, %67 : vector<8x128xf32>
    %70 = arith.divf %68, %69 : vector<8x128xf32>
    %71 = arith.mulf %62, %37 : vector<8x128xf32>
    %72 = arith.mulf %56, %64 : vector<8x128xf32>
    %73 = arith.addf %71, %72 : vector<8x128xf32>
    %74 = math.tanh %73 : vector<8x128xf32>
    %75 = arith.mulf %70, %74 : vector<8x128xf32>
    %76 = arith.index_cast %c1_i32 : i32 to index
    %c0_24 = arith.constant 0 : index
    %c0_25 = arith.constant 0 : index
    %77 = vector.load %arg5[%76, %c0_24, %c0_25] : memref<8x8x128xf32, #tpu.memory_space<vmem>>, vector<1x8x128xf32>
    %78 = vector.shape_cast %77 : vector<1x8x128xf32> to vector<8x128xf32>
    %79 = vector.shape_cast %75 : vector<8x128xf32> to vector<1x8x128xf32>
    tpu.vector_store %arg5[%76, %c0_24, %c0_25], %79 {strides = array<i32>} : memref<8x8x128xf32, #tpu.memory_space<vmem>>, vector<1x8x128xf32>,
    %c2_i32 = arith.constant 2 : i32
    %80 = arith.index_cast %c2_i32 : i32 to index
    %c0_26 = arith.constant 0 : index
    %c0_27 = arith.constant 0 : index
    %81 = vector.load %arg8[%80, %c0_26, %c0_27] : memref<8x8x512xf32, #tpu.memory_space<vmem>>, vector<1x8x512xf32>
    %82 = vector.shape_cast %81 : vector<1x8x512xf32> to vector<8x512xf32>
    %c0_28 = arith.constant 0 : index
    %c0_29 = arith.constant 0 : index
    %c0_30 = arith.constant 0 : index
    %83 = vector.load %arg3[%c0_28, %c0_29, %c0_30] : memref<1x128x512xf32, #tpu.memory_space<vmem>>, vector<1x128x512xf32>
    %84 = vector.shape_cast %83 : vector<1x128x512xf32> to vector<128x512xf32>
    %cst_31 = arith.constant dense<0.000000e+00> : vector<8x512xf32>
    %85 = tpu.matmul %75, %84, %cst_31 {dimension_numbers = #tpu.dot_dimension_numbers<[1], [0], [0], [1], [0, 0, 1, 1], [], []>} : vector<8x128xf32>, vector<128x512xf32>, vector<8x512xf32> -> vector<8x512xf32>
    %86 = arith.addf %82, %85 : vector<8x512xf32>
    %87 = vector.extract_strided_slice %86 {offsets = [0, 0], sizes = [8, 128], strides = [1, 1]} : vector<8x512xf32> to vector<8x128xf32>
    %88 = arith.negf %87 : vector<8x128xf32>
    %89 = math.exp %88 : vector<8x128xf32>
    %cst_32 = arith.constant 1.000000e+00 : f32
    %90 = vector.broadcast %cst_32 : f32 to vector<8x128xf32>
    %91 = arith.addf %90, %89 : vector<8x128xf32>
    %92 = arith.divf %90, %91 : vector<8x128xf32>
    %93 = vector.extract_strided_slice %86 {offsets = [0, 128], sizes = [8, 128], strides = [1, 1]} : vector<8x512xf32> to vector<8x128xf32>
    %94 = arith.negf %93 : vector<8x128xf32>
    %95 = math.exp %94 : vector<8x128xf32>
    %cst_33 = arith.constant 1.000000e+00 : f32
    %96 = vector.broadcast %cst_33 : f32 to vector<8x128xf32>
    %97 = arith.addf %96, %95 : vector<8x128xf32>
    %98 = arith.divf %96, %97 : vector<8x128xf32>
    %99 = vector.extract_strided_slice %86 {offsets = [0, 256], sizes = [8, 128], strides = [1, 1]} : vector<8x512xf32> to vector<8x128xf32>
    %100 = math.tanh %99 : vector<8x128xf32>
    %101 = vector.extract_strided_slice %86 {offsets = [0, 384], sizes = [8, 128], strides = [1, 1]} : vector<8x512xf32> to vector<8x128xf32>
    %102 = arith.negf %101 : vector<8x128xf32>
    %103 = math.exp %102 : vector<8x128xf32>
    %cst_34 = arith.constant 1.000000e+00 : f32
    %104 = vector.broadcast %cst_34 : f32 to vector<8x128xf32>
    %105 = arith.addf %104, %103 : vector<8x128xf32>
    %106 = arith.divf %104, %105 : vector<8x128xf32>
    %107 = arith.mulf %98, %73 : vector<8x128xf32>
    %108 = arith.mulf %92, %100 : vector<8x128xf32>
    %109 = arith.addf %107, %108 : vector<8x128xf32>
    %110 = math.tanh %109 : vector<8x128xf32>
    %111 = arith.mulf %106, %110 : vector<8x128xf32>
    %112 = arith.index_cast %c2_i32 : i32 to index
    %c0_35 = arith.constant 0 : index
    %c0_36 = arith.constant 0 : index
    %113 = vector.load %arg5[%112, %c0_35, %c0_36] : memref<8x8x128xf32, #tpu.memory_space<vmem>>, vector<1x8x128xf32>
    %114 = vector.shape_cast %113 : vector<1x8x128xf32> to vector<8x128xf32>
    %115 = vector.shape_cast %111 : vector<8x128xf32> to vector<1x8x128xf32>
    tpu.vector_store %arg5[%112, %c0_35, %c0_36], %115 {strides = array<i32>} : memref<8x8x128xf32, #tpu.memory_space<vmem>>, vector<1x8x128xf32>,
    %c3_i32 = arith.constant 3 : i32
    %116 = arith.index_cast %c3_i32 : i32 to index
    %c0_37 = arith.constant 0 : index
    %c0_38 = arith.constant 0 : index
    %117 = vector.load %arg8[%116, %c0_37, %c0_38] : memref<8x8x512xf32, #tpu.memory_space<vmem>>, vector<1x8x512xf32>
    %118 = vector.shape_cast %117 : vector<1x8x512xf32> to vector<8x512xf32>
    %c0_39 = arith.constant 0 : index
    %c0_40 = arith.constant 0 : index
    %c0_41 = arith.constant 0 : index
    %119 = vector.load %arg3[%c0_39, %c0_40, %c0_41] : memref<1x128x512xf32, #tpu.memory_space<vmem>>, vector<1x128x512xf32>
    %120 = vector.shape_cast %119 : vector<1x128x512xf32> to vector<128x512xf32>
    %cst_42 = arith.constant dense<0.000000e+00> : vector<8x512xf32>
    %121 = tpu.matmul %111, %120, %cst_42 {dimension_numbers = #tpu.dot_dimension_numbers<[1], [0], [0], [1], [0, 0, 1, 1], [], []>} : vector<8x128xf32>, vector<128x512xf32>, vector<8x512xf32> -> vector<8x512xf32>
    %122 = arith.addf %118, %121 : vector<8x512xf32>
    %123 = vector.extract_strided_slice %122 {offsets = [0, 0], sizes = [8, 128], strides = [1, 1]} : vector<8x512xf32> to vector<8x128xf32>
    %124 = arith.negf %123 : vector<8x128xf32>
    %125 = math.exp %124 : vector<8x128xf32>
    %cst_43 = arith.constant 1.000000e+00 : f32
    %126 = vector.broadcast %cst_43 : f32 to vector<8x128xf32>
    %127 = arith.addf %126, %125 : vector<8x128xf32>
    %128 = arith.divf %126, %127 : vector<8x128xf32>
    %129 = vector.extract_strided_slice %122 {offsets = [0, 128], sizes = [8, 128], strides = [1, 1]} : vector<8x512xf32> to vector<8x128xf32>
    %130 = arith.negf %129 : vector<8x128xf32>
    %131 = math.exp %130 : vector<8x128xf32>
    %cst_44 = arith.constant 1.000000e+00 : f32
    %132 = vector.broadcast %cst_44 : f32 to vector<8x128xf32>
    %133 = arith.addf %132, %131 : vector<8x128xf32>
    %134 = arith.divf %132, %133 : vector<8x128xf32>
    %135 = vector.extract_strided_slice %122 {offsets = [0, 256], sizes = [8, 128], strides = [1, 1]} : vector<8x512xf32> to vector<8x128xf32>
    %136 = math.tanh %135 : vector<8x128xf32>
    %137 = vector.extract_strided_slice %122 {offsets = [0, 384], sizes = [8, 128], strides = [1, 1]} : vector<8x512xf32> to vector<8x128xf32>
    %138 = arith.negf %137 : vector<8x128xf32>
    %139 = math.exp %138 : vector<8x128xf32>
    %cst_45 = arith.constant 1.000000e+00 : f32
    %140 = vector.broadcast %cst_45 : f32 to vector<8x128xf32>
    %141 = arith.addf %140, %139 : vector<8x128xf32>
    %142 = arith.divf %140, %141 : vector<8x128xf32>
    %143 = arith.mulf %134, %109 : vector<8x128xf32>
    %144 = arith.mulf %128, %136 : vector<8x128xf32>
    %145 = arith.addf %143, %144 : vector<8x128xf32>
    %146 = math.tanh %145 : vector<8x128xf32>
    %147 = arith.mulf %142, %146 : vector<8x128xf32>
    %148 = arith.index_cast %c3_i32 : i32 to index
    %c0_46 = arith.constant 0 : index
    %c0_47 = arith.constant 0 : index
    %149 = vector.load %arg5[%148, %c0_46, %c0_47] : memref<8x8x128xf32, #tpu.memory_space<vmem>>, vector<1x8x128xf32>
    %150 = vector.shape_cast %149 : vector<1x8x128xf32> to vector<8x128xf32>
    %151 = vector.shape_cast %147 : vector<8x128xf32> to vector<1x8x128xf32>
    tpu.vector_store %arg5[%148, %c0_46, %c0_47], %151 {strides = array<i32>} : memref<8x8x128xf32, #tpu.memory_space<vmem>>, vector<1x8x128xf32>,
    %c4_i32 = arith.constant 4 : i32
    %152 = arith.index_cast %c4_i32 : i32 to index
    %c0_48 = arith.constant 0 : index
    %c0_49 = arith.constant 0 : index
    %153 = vector.load %arg8[%152, %c0_48, %c0_49] : memref<8x8x512xf32, #tpu.memory_space<vmem>>, vector<1x8x512xf32>
    %154 = vector.shape_cast %153 : vector<1x8x512xf32> to vector<8x512xf32>
    %c0_50 = arith.constant 0 : index
    %c0_51 = arith.constant 0 : index
    %c0_52 = arith.constant 0 : index
    %155 = vector.load %arg3[%c0_50, %c0_51, %c0_52] : memref<1x128x512xf32, #tpu.memory_space<vmem>>, vector<1x128x512xf32>
    %156 = vector.shape_cast %155 : vector<1x128x512xf32> to vector<128x512xf32>
    %cst_53 = arith.constant dense<0.000000e+00> : vector<8x512xf32>
    %157 = tpu.matmul %147, %156, %cst_53 {dimension_numbers = #tpu.dot_dimension_numbers<[1], [0], [0], [1], [0, 0, 1, 1], [], []>} : vector<8x128xf32>, vector<128x512xf32>, vector<8x512xf32> -> vector<8x512xf32>
    %158 = arith.addf %154, %157 : vector<8x512xf32>
    %159 = vector.extract_strided_slice %158 {offsets = [0, 0], sizes = [8, 128], strides = [1, 1]} : vector<8x512xf32> to vector<8x128xf32>
    %160 = arith.negf %159 : vector<8x128xf32>
    %161 = math.exp %160 : vector<8x128xf32>
    %cst_54 = arith.constant 1.000000e+00 : f32
    %162 = vector.broadcast %cst_54 : f32 to vector<8x128xf32>
    %163 = arith.addf %162, %161 : vector<8x128xf32>
    %164 = arith.divf %162, %163 : vector<8x128xf32>
    %165 = vector.extract_strided_slice %158 {offsets = [0, 128], sizes = [8, 128], strides = [1, 1]} : vector<8x512xf32> to vector<8x128xf32>
    %166 = arith.negf %165 : vector<8x128xf32>
    %167 = math.exp %166 : vector<8x128xf32>
    %cst_55 = arith.constant 1.000000e+00 : f32
    %168 = vector.broadcast %cst_55 : f32 to vector<8x128xf32>
    %169 = arith.addf %168, %167 : vector<8x128xf32>
    %170 = arith.divf %168, %169 : vector<8x128xf32>
    %171 = vector.extract_strided_slice %158 {offsets = [0, 256], sizes = [8, 128], strides = [1, 1]} : vector<8x512xf32> to vector<8x128xf32>
    %172 = math.tanh %171 : vector<8x128xf32>
    %173 = vector.extract_strided_slice %158 {offsets = [0, 384], sizes = [8, 128], strides = [1, 1]} : vector<8x512xf32> to vector<8x128xf32>
    %174 = arith.negf %173 : vector<8x128xf32>
    %175 = math.exp %174 : vector<8x128xf32>
    %cst_56 = arith.constant 1.000000e+00 : f32
    %176 = vector.broadcast %cst_56 : f32 to vector<8x128xf32>
    %177 = arith.addf %176, %175 : vector<8x128xf32>
    %178 = arith.divf %176, %177 : vector<8x128xf32>
    %179 = arith.mulf %170, %145 : vector<8x128xf32>
    %180 = arith.mulf %164, %172 : vector<8x128xf32>
    %181 = arith.addf %179, %180 : vector<8x128xf32>
    %182 = math.tanh %181 : vector<8x128xf32>
    %183 = arith.mulf %178, %182 : vector<8x128xf32>
    %184 = arith.index_cast %c4_i32 : i32 to index
    %c0_57 = arith.constant 0 : index
    %c0_58 = arith.constant 0 : index
    %185 = vector.load %arg5[%184, %c0_57, %c0_58] : memref<8x8x128xf32, #tpu.memory_space<vmem>>, vector<1x8x128xf32>
    %186 = vector.shape_cast %185 : vector<1x8x128xf32> to vector<8x128xf32>
    %187 = vector.shape_cast %183 : vector<8x128xf32> to vector<1x8x128xf32>
    tpu.vector_store %arg5[%184, %c0_57, %c0_58], %187 {strides = array<i32>} : memref<8x8x128xf32, #tpu.memory_space<vmem>>, vector<1x8x128xf32>,
    %c5_i32 = arith.constant 5 : i32
    %188 = arith.index_cast %c5_i32 : i32 to index
    %c0_59 = arith.constant 0 : index
    %c0_60 = arith.constant 0 : index
    %189 = vector.load %arg8[%188, %c0_59, %c0_60] : memref<8x8x512xf32, #tpu.memory_space<vmem>>, vector<1x8x512xf32>
    %190 = vector.shape_cast %189 : vector<1x8x512xf32> to vector<8x512xf32>
    %c0_61 = arith.constant 0 : index
    %c0_62 = arith.constant 0 : index
    %c0_63 = arith.constant 0 : index
    %191 = vector.load %arg3[%c0_61, %c0_62, %c0_63] : memref<1x128x512xf32, #tpu.memory_space<vmem>>, vector<1x128x512xf32>
    %192 = vector.shape_cast %191 : vector<1x128x512xf32> to vector<128x512xf32>
    %cst_64 = arith.constant dense<0.000000e+00> : vector<8x512xf32>
    %193 = tpu.matmul %183, %192, %cst_64 {dimension_numbers = #tpu.dot_dimension_numbers<[1], [0], [0], [1], [0, 0, 1, 1], [], []>} : vector<8x128xf32>, vector<128x512xf32>, vector<8x512xf32> -> vector<8x512xf32>
    %194 = arith.addf %190, %193 : vector<8x512xf32>
    %195 = vector.extract_strided_slice %194 {offsets = [0, 0], sizes = [8, 128], strides = [1, 1]} : vector<8x512xf32> to vector<8x128xf32>
    %196 = arith.negf %195 : vector<8x128xf32>
    %197 = math.exp %196 : vector<8x128xf32>
    %cst_65 = arith.constant 1.000000e+00 : f32
    %198 = vector.broadcast %cst_65 : f32 to vector<8x128xf32>
    %199 = arith.addf %198, %197 : vector<8x128xf32>
    %200 = arith.divf %198, %199 : vector<8x128xf32>
    %201 = vector.extract_strided_slice %194 {offsets = [0, 128], sizes = [8, 128], strides = [1, 1]} : vector<8x512xf32> to vector<8x128xf32>
    %202 = arith.negf %201 : vector<8x128xf32>
    %203 = math.exp %202 : vector<8x128xf32>
    %cst_66 = arith.constant 1.000000e+00 : f32
    %204 = vector.broadcast %cst_66 : f32 to vector<8x128xf32>
    %205 = arith.addf %204, %203 : vector<8x128xf32>
    %206 = arith.divf %204, %205 : vector<8x128xf32>
    %207 = vector.extract_strided_slice %194 {offsets = [0, 256], sizes = [8, 128], strides = [1, 1]} : vector<8x512xf32> to vector<8x128xf32>
    %208 = math.tanh %207 : vector<8x128xf32>
    %209 = vector.extract_strided_slice %194 {offsets = [0, 384], sizes = [8, 128], strides = [1, 1]} : vector<8x512xf32> to vector<8x128xf32>
    %210 = arith.negf %209 : vector<8x128xf32>
    %211 = math.exp %210 : vector<8x128xf32>
    %cst_67 = arith.constant 1.000000e+00 : f32
    %212 = vector.broadcast %cst_67 : f32 to vector<8x128xf32>
    %213 = arith.addf %212, %211 : vector<8x128xf32>
    %214 = arith.divf %212, %213 : vector<8x128xf32>
    %215 = arith.mulf %206, %181 : vector<8x128xf32>
    %216 = arith.mulf %200, %208 : vector<8x128xf32>
    %217 = arith.addf %215, %216 : vector<8x128xf32>
    %218 = math.tanh %217 : vector<8x128xf32>
    %219 = arith.mulf %214, %218 : vector<8x128xf32>
    %220 = arith.index_cast %c5_i32 : i32 to index
    %c0_68 = arith.constant 0 : index
    %c0_69 = arith.constant 0 : index
    %221 = vector.load %arg5[%220, %c0_68, %c0_69] : memref<8x8x128xf32, #tpu.memory_space<vmem>>, vector<1x8x128xf32>
    %222 = vector.shape_cast %221 : vector<1x8x128xf32> to vector<8x128xf32>
    %223 = vector.shape_cast %219 : vector<8x128xf32> to vector<1x8x128xf32>
    tpu.vector_store %arg5[%220, %c0_68, %c0_69], %223 {strides = array<i32>} : memref<8x8x128xf32, #tpu.memory_space<vmem>>, vector<1x8x128xf32>,
    %c6_i32 = arith.constant 6 : i32
    %224 = arith.index_cast %c6_i32 : i32 to index
    %c0_70 = arith.constant 0 : index
    %c0_71 = arith.constant 0 : index
    %225 = vector.load %arg8[%224, %c0_70, %c0_71] : memref<8x8x512xf32, #tpu.memory_space<vmem>>, vector<1x8x512xf32>
    %226 = vector.shape_cast %225 : vector<1x8x512xf32> to vector<8x512xf32>
    %c0_72 = arith.constant 0 : index
    %c0_73 = arith.constant 0 : index
    %c0_74 = arith.constant 0 : index
    %227 = vector.load %arg3[%c0_72, %c0_73, %c0_74] : memref<1x128x512xf32, #tpu.memory_space<vmem>>, vector<1x128x512xf32>
    %228 = vector.shape_cast %227 : vector<1x128x512xf32> to vector<128x512xf32>
    %cst_75 = arith.constant dense<0.000000e+00> : vector<8x512xf32>
    %229 = tpu.matmul %219, %228, %cst_75 {dimension_numbers = #tpu.dot_dimension_numbers<[1], [0], [0], [1], [0, 0, 1, 1], [], []>} : vector<8x128xf32>, vector<128x512xf32>, vector<8x512xf32> -> vector<8x512xf32>
    %230 = arith.addf %226, %229 : vector<8x512xf32>
    %231 = vector.extract_strided_slice %230 {offsets = [0, 0], sizes = [8, 128], strides = [1, 1]} : vector<8x512xf32> to vector<8x128xf32>
    %232 = arith.negf %231 : vector<8x128xf32>
    %233 = math.exp %232 : vector<8x128xf32>
    %cst_76 = arith.constant 1.000000e+00 : f32
    %234 = vector.broadcast %cst_76 : f32 to vector<8x128xf32>
    %235 = arith.addf %234, %233 : vector<8x128xf32>
    %236 = arith.divf %234, %235 : vector<8x128xf32>
    %237 = vector.extract_strided_slice %230 {offsets = [0, 128], sizes = [8, 128], strides = [1, 1]} : vector<8x512xf32> to vector<8x128xf32>
    %238 = arith.negf %237 : vector<8x128xf32>
    %239 = math.exp %238 : vector<8x128xf32>
    %cst_77 = arith.constant 1.000000e+00 : f32
    %240 = vector.broadcast %cst_77 : f32 to vector<8x128xf32>
    %241 = arith.addf %240, %239 : vector<8x128xf32>
    %242 = arith.divf %240, %241 : vector<8x128xf32>
    %243 = vector.extract_strided_slice %230 {offsets = [0, 256], sizes = [8, 128], strides = [1, 1]} : vector<8x512xf32> to vector<8x128xf32>
    %244 = math.tanh %243 : vector<8x128xf32>
    %245 = vector.extract_strided_slice %230 {offsets = [0, 384], sizes = [8, 128], strides = [1, 1]} : vector<8x512xf32> to vector<8x128xf32>
    %246 = arith.negf %245 : vector<8x128xf32>
    %247 = math.exp %246 : vector<8x128xf32>
    %cst_78 = arith.constant 1.000000e+00 : f32
    %248 = vector.broadcast %cst_78 : f32 to vector<8x128xf32>
    %249 = arith.addf %248, %247 : vector<8x128xf32>
    %250 = arith.divf %248, %249 : vector<8x128xf32>
    %251 = arith.mulf %242, %217 : vector<8x128xf32>
    %252 = arith.mulf %236, %244 : vector<8x128xf32>
    %253 = arith.addf %251, %252 : vector<8x128xf32>
    %254 = math.tanh %253 : vector<8x128xf32>
    %255 = arith.mulf %250, %254 : vector<8x128xf32>
    %256 = arith.index_cast %c6_i32 : i32 to index
    %c0_79 = arith.constant 0 : index
    %c0_80 = arith.constant 0 : index
    %257 = vector.load %arg5[%256, %c0_79, %c0_80] : memref<8x8x128xf32, #tpu.memory_space<vmem>>, vector<1x8x128xf32>
    %258 = vector.shape_cast %257 : vector<1x8x128xf32> to vector<8x128xf32>
    %259 = vector.shape_cast %255 : vector<8x128xf32> to vector<1x8x128xf32>
    tpu.vector_store %arg5[%256, %c0_79, %c0_80], %259 {strides = array<i32>} : memref<8x8x128xf32, #tpu.memory_space<vmem>>, vector<1x8x128xf32>,
    %c7_i32 = arith.constant 7 : i32
    %260 = arith.index_cast %c7_i32 : i32 to index
    %c0_81 = arith.constant 0 : index
    %c0_82 = arith.constant 0 : index
    %261 = vector.load %arg8[%260, %c0_81, %c0_82] : memref<8x8x512xf32, #tpu.memory_space<vmem>>, vector<1x8x512xf32>
    %262 = vector.shape_cast %261 : vector<1x8x512xf32> to vector<8x512xf32>
    %c0_83 = arith.constant 0 : index
    %c0_84 = arith.constant 0 : index
    %c0_85 = arith.constant 0 : index
    %263 = vector.load %arg3[%c0_83, %c0_84, %c0_85] : memref<1x128x512xf32, #tpu.memory_space<vmem>>, vector<1x128x512xf32>
    %264 = vector.shape_cast %263 : vector<1x128x512xf32> to vector<128x512xf32>
    %cst_86 = arith.constant dense<0.000000e+00> : vector<8x512xf32>
    %265 = tpu.matmul %255, %264, %cst_86 {dimension_numbers = #tpu.dot_dimension_numbers<[1], [0], [0], [1], [0, 0, 1, 1], [], []>} : vector<8x128xf32>, vector<128x512xf32>, vector<8x512xf32> -> vector<8x512xf32>
    %266 = arith.addf %262, %265 : vector<8x512xf32>
    %267 = vector.extract_strided_slice %266 {offsets = [0, 0], sizes = [8, 128], strides = [1, 1]} : vector<8x512xf32> to vector<8x128xf32>
    %268 = arith.negf %267 : vector<8x128xf32>
    %269 = math.exp %268 : vector<8x128xf32>
    %cst_87 = arith.constant 1.000000e+00 : f32
    %270 = vector.broadcast %cst_87 : f32 to vector<8x128xf32>
    %271 = arith.addf %270, %269 : vector<8x128xf32>
    %272 = arith.divf %270, %271 : vector<8x128xf32>
    %273 = vector.extract_strided_slice %266 {offsets = [0, 128], sizes = [8, 128], strides = [1, 1]} : vector<8x512xf32> to vector<8x128xf32>
    %274 = arith.negf %273 : vector<8x128xf32>
    %275 = math.exp %274 : vector<8x128xf32>
    %cst_88 = arith.constant 1.000000e+00 : f32
    %276 = vector.broadcast %cst_88 : f32 to vector<8x128xf32>
    %277 = arith.addf %276, %275 : vector<8x128xf32>
    %278 = arith.divf %276, %277 : vector<8x128xf32>
    %279 = vector.extract_strided_slice %266 {offsets = [0, 256], sizes = [8, 128], strides = [1, 1]} : vector<8x512xf32> to vector<8x128xf32>
    %280 = math.tanh %279 : vector<8x128xf32>
    %281 = vector.extract_strided_slice %266 {offsets = [0, 384], sizes = [8, 128], strides = [1, 1]} : vector<8x512xf32> to vector<8x128xf32>
    %282 = arith.negf %281 : vector<8x128xf32>
    %283 = math.exp %282 : vector<8x128xf32>
    %cst_89 = arith.constant 1.000000e+00 : f32
    %284 = vector.broadcast %cst_89 : f32 to vector<8x128xf32>
    %285 = arith.addf %284, %283 : vector<8x128xf32>
    %286 = arith.divf %284, %285 : vector<8x128xf32>
    %287 = arith.mulf %278, %253 : vector<8x128xf32>
    %288 = arith.mulf %272, %280 : vector<8x128xf32>
    %289 = arith.addf %287, %288 : vector<8x128xf32>
    %290 = math.tanh %289 : vector<8x128xf32>
    %291 = arith.mulf %286, %290 : vector<8x128xf32>
    %292 = arith.index_cast %c7_i32 : i32 to index
    %c0_90 = arith.constant 0 : index
    %c0_91 = arith.constant 0 : index
    %293 = vector.load %arg5[%292, %c0_90, %c0_91] : memref<8x8x128xf32, #tpu.memory_space<vmem>>, vector<1x8x128xf32>
    %294 = vector.shape_cast %293 : vector<1x8x128xf32> to vector<8x128xf32>
    %295 = vector.shape_cast %291 : vector<8x128xf32> to vector<1x8x128xf32>
    tpu.vector_store %arg5[%292, %c0_90, %c0_91], %295 {strides = array<i32>} : memref<8x8x128xf32, #tpu.memory_space<vmem>>, vector<1x8x128xf32>,
    %c8_i32 = arith.constant 8 : i32
    %c0_92 = arith.constant 0 : index
    %c0_93 = arith.constant 0 : index
    %c0_94 = arith.constant 0 : index
    %296 = vector.load %arg6[%c0_92, %c0_93, %c0_94] : memref<1x8x128xf32, #tpu.memory_space<vmem>>, vector<1x8x128xf32>
    %297 = vector.shape_cast %296 : vector<1x8x128xf32> to vector<8x128xf32>
    %298 = vector.shape_cast %291 : vector<8x128xf32> to vector<1x8x128xf32>
    tpu.vector_store %arg6[%c0_92, %c0_93, %c0_94], %298 {strides = array<i32>} : memref<1x8x128xf32, #tpu.memory_space<vmem>>, vector<1x8x128xf32>,
    %c0_95 = arith.constant 0 : index
    %c0_96 = arith.constant 0 : index
    %c0_97 = arith.constant 0 : index
    %299 = vector.load %arg7[%c0_95, %c0_96, %c0_97] : memref<1x8x128xf32, #tpu.memory_space<vmem>>, vector<1x8x128xf32>
    %300 = vector.shape_cast %299 : vector<1x8x128xf32> to vector<8x128xf32>
    %301 = vector.shape_cast %289 : vector<8x128xf32> to vector<1x8x128xf32>
    tpu.vector_store %arg7[%c0_95, %c0_96, %c0_97], %301 {strides = array<i32>} : memref<1x8x128xf32, #tpu.memory_space<vmem>>, vector<1x8x128xf32>,
    return
  }
  func.func @transform_0(%arg0: i32) -> (i32, i32, i32) {
    %c0_i32 = arith.constant 0 : i32
    %c0_i32_0 = arith.constant 0 : i32
    %c0_i32_1 = arith.constant 0 : i32
    %c0_i32_2 = arith.constant 0 : i32
    return %c0_i32, %c0_i32_0, %c0_i32_1 : i32, i32, i32
  }
  func.func @transform_1(%arg0: i32) -> (i32, i32, i32) {
    %c0_i32 = arith.constant 0 : i32
    %c0_i32_0 = arith.constant 0 : i32
    %c0_i32_1 = arith.constant 0 : i32
    return %arg0, %c0_i32, %c0_i32_0 : i32, i32, i32
  }
  func.func @transform_2(%arg0: i32) -> (i32, i32, i32) {
    %c0_i32 = arith.constant 0 : i32
    %c0_i32_0 = arith.constant 0 : i32
    %c0_i32_1 = arith.constant 0 : i32
    return %arg0, %c0_i32, %c0_i32_0 : i32, i32, i32
  }
  func.func @transform_3(%arg0: i32) -> (i32, i32, i32) {
    %c0_i32 = arith.constant 0 : i32
    %c0_i32_0 = arith.constant 0 : i32
    %c0_i32_1 = arith.constant 0 : i32
    return %arg0, %c0_i32, %c0_i32_0 : i32, i32, i32
  }
  func.func @transform_4(%arg0: i32) -> (i32, i32, i32) {
    %c0_i32 = arith.constant 0 : i32
    %c0_i32_0 = arith.constant 0 : i32
    %c0_i32_1 = arith.constant 0 : i32
    %c0_i32_2 = arith.constant 0 : i32
    return %c0_i32, %c0_i32_0, %c0_i32_1 : i32, i32, i32
  }
  func.func @transform_5(%arg0: i32) -> (i32, i32, i32) {
    %c0_i32 = arith.constant 0 : i32
    %c0_i32_0 = arith.constant 0 : i32
    %c0_i32_1 = arith.constant 0 : i32
    return %arg0, %c0_i32, %c0_i32_0 : i32, i32, i32
  }
  func.func @transform_6(%arg0: i32) -> (i32, i32, i32) {
    %c0_i32 = arith.constant 0 : i32
    %c0_i32_0 = arith.constant 0 : i32
    %c0_i32_1 = arith.constant 0 : i32
    return %arg0, %c0_i32, %c0_i32_0 : i32, i32, i32
  }
}

</mosaic_0001>

<bundles_post_ra>
// kernel: encoder_rnn_forward.1
= control target key start
LH: loop header
LB: loop body
LE: loop exit
PB: predicated region body
PF: predicated region fallthrough
CT: control target
= control target key end

     0   :  { %12 = vsyncpa [#allocation4], 0  ;;  %s4495_s0 = inlined_call_operand.vmem [shape: f32[8,8,512], index: 0, kind: input, shape index: {}]   ;;  %s4496_s1 = inlined_call_operand.vmem [shape: f32[3,128,512], index: 1, kind: input, shape index: {}]   ;;  %s4497_s2 = inlined_call_operand.vmem [shape: f32[3,128,512], index: 2, kind: input, shape index: {}]   ;;  %s4498_s3 = inlined_call_operand.vmem [shape: f32[3,1,512], index: 3, kind: input, shape index: {}]   ;;  %s4499_s4 = inlined_call_operand.vmem [shape: f32[8,8,128], index: 4, kind: output, shape index: {0}]   ;;  %s4500_s5 = inlined_call_operand.hbm [shape: f32[3,8,128], index: 5, kind: output, shape index: {1}]   ;;  %s4501_s6 = inlined_call_operand.hbm [shape: f32[3,8,128], index: 6, kind: output, shape index: {2}]  }
   0x1   :  { %14 = vsyncpa [#allocation4 + $0x1], 0 }
   0x2   :  { %15 = vsyncpa [#allocation6], 0 }
   0x3   :  { %17 = vsyncpa [#allocation6 + $0x1], 0  ;;  %s3157_s21 = smov 0   ;;  %s3159_s22 = smov 0  }
   0x4   :  { %s3161_s23 = smov 0   ;;  %s3163_s24 = smov 0  }
   0x5 LB: > { %s3178_s25 = sadd.s32 4294967295, %s3116_s24   ;;  %s2800_s26 = sadd.s32 4294967294, %s3116_s24   ;;  %s3116_s24 = sphi %s3163_s24, %s4686_s24   ;;  %s3112_s23 = sphi %s3161_s23, %s4685_s23   ;;  %s3108_s22 = sphi %s3159_s22, %s4684_s22   ;;  %s3104_s21 = sphi %s3157_s21, %s4683_s21  }
   0x6   : > { %s3182_s27 = sadd.s32 1, %s3116_s24   ;;  %s150_s28 = sadd.s32 1, %s3112_s23 }
   0x7   : > { %s147_s29 = ssub.s32 %s3116_s24, %s3182_s27  ;;  %p160_p0 = scmp.ne.s32.totalorder %s3112_s23, %s3108_s22 }
   0x8   : > { %p148_p1 = scmp.eq.s32.totalorder %s147_s29, 0  ;;  %p161_p2 = scmp.eq.s32.totalorder %s3178_s25, 2 }
   0x9   : > { %p166_p3 = scmp.ne.s32.totalorder %s3108_s22, %s3104_s21  ;;  %p167_p4 = scmp.eq.s32.totalorder %s2800_s26, 2 }
   0xa   : > { %s3193_s30 = scalar_select %p148_p1, %s3112_s23, %s150_s28  }
   0xb   : > { %p3195_p5 = por %p161_p2, %p160_p0  ;;  %p3199_p6 = por %p167_p4, %p166_p3 }
   0xc   : > { %4576 = sst [smem:[#allocation9_spill]] %s3193_s30  ;;  %p2803_p7 = scmp.ge.s32.totalorder %s3116_s24, 1 }
   0xd   : > { %p237_p8 = scmp.lt.s32.totalorder %s3116_s24, 4 }
   0xf   : > { %p238_p9 = pnand %p2803_p7, %p237_p8 }
  0x11   : > { %241 = sbr.rel (%p238_p9) target bundleno = 2362 (0x93a), region = 36 }
  0x16   : > { %s3206_s9 = sand.u32 1, %s3108_s22   ;;  %p281_p10 = scmp.lt.s32.totalorder %s3178_s25, 2 }
  0x17   : > { %s2804_s10 = sshll.u32 %s3206_s9, 3  ;;  %p2811_p11 = scmp.ne.s32.totalorder %s3178_s25, 0 }
  0x18   : > { %s282_s11 = scalar_select %p281_p10, %s3178_s25, 2 }
  0x19   : > { %s3226_s29 = scalar_lea.vmem [#allocation3], %s2804_s10  ;;  %s3228_s30 = scalar_lea.vmem [#allocation5], %s2804_s10 }
  0x1a   : > { %s2850_s12 = sshll.u32 %s282_s11, 9  ;;  %s2810_s13 = sshll.u32 %s282_s11, 2 }
  0x1b   : > { %s3214_s16 = scalar_lea.vmem %s4496_s1, %s2850_s12  ;;  %s3219_s19 = scalar_lea.vmem %s4497_s2, %s2850_s12 }
  0x1c   : > { %s3224_s28 = scalar_lea.vmem %s4498_s3, %s2810_s13  ;;  %298 = sbr.rel (%p2811_p11) target bundleno = 50 (0x32), region = 40 }
  0x21   : > { %v299_v0 = vld [vmem:[%s4495_s0] sm:$0xff]  ;;  %v300_v1 = vld [vmem:[%s4495_s0 + $0x8] sm:$0xff]  ;;  %v301_v2 = vld [vmem:[%s4495_s0 + $0x10] sm:$0xff] }
  0x22   : > { %331 = vst [vmem:[#allocation2 + $0xb0] sm:$0xff] %v299_v0  ;;  %332 = vst [vmem:[#allocation2] sm:$0xff] %v300_v1  ;;  %v302_v3 = vld [vmem:[%s4495_s0 + $0x18] sm:$0xff]  ;;  %v303_v4 = vld [vmem:[%s4495_s0 + $0x20] sm:$0xff] }
  0x23   : > { %333 = vst [vmem:[#allocation2 + $0xd8] sm:$0xff] %v301_v2  ;;  %v304_v5 = vld [vmem:[%s4495_s0 + $0x28] sm:$0xff]  ;;  %334 = vst [vmem:[#allocation2 + $0x18] sm:$0xff] %v302_v3  ;;  %v305_v6 = vld [vmem:[%s4495_s0 + $0x30] sm:$0xff] }
  0x24   : > { %335 = vst [vmem:[#allocation2 + $0x50] sm:$0xff] %v303_v4  ;;  %336 = vst [vmem:[#allocation2 + $0x68] sm:$0xff] %v304_v5  ;;  %v306_v7 = vld [vmem:[%s4495_s0 + $0x38] sm:$0xff]  ;;  %v307_v8 = vld [vmem:[%s4495_s0 + $0x40] sm:$0xff] }
  0x25   : > { %337 = vst [vmem:[#allocation2 + $0x30] sm:$0xff] %v305_v6  ;;  %338 = vst [vmem:[#allocation2 + $0x48] sm:$0xff] %v306_v7  ;;  %v308_v9 = vld [vmem:[%s4495_s0 + $0x48] sm:$0xff]  ;;  %v309_v10 = vld [vmem:[%s4495_s0 + $0x50] sm:$0xff] }
  0x26   : > { %339 = vst [vmem:[#allocation2 + $0x80] sm:$0xff] %v307_v8  ;;  %v310_v11 = vld [vmem:[%s4495_s0 + $0x58] sm:$0xff]  ;;  %340 = vst [vmem:[#allocation2 + $0x88] sm:$0xff] %v308_v9  ;;  %v311_v12 = vld [vmem:[%s4495_s0 + $0x60] sm:$0xff] }
  0x27   : > { %341 = vst [vmem:[#allocation2 + $0xe8] sm:$0xff] %v309_v10  ;;  %342 = vst [vmem:[#allocation2 + $0xb8] sm:$0xff] %v310_v11  ;;  %v312_v13 = vld [vmem:[%s4495_s0 + $0x68] sm:$0xff]  ;;  %v313_v14 = vld [vmem:[%s4495_s0 + $0x70] sm:$0xff] }
  0x28   : > { %343 = vst [vmem:[#allocation2 + $0x60] sm:$0xff] %v311_v12  ;;  %344 = vst [vmem:[#allocation2 + $0xf0] sm:$0xff] %v312_v13  ;;  %v314_v15 = vld [vmem:[%s4495_s0 + $0x78] sm:$0xff]  ;;  %v315_v16 = vld [vmem:[%s4495_s0 + $0x80] sm:$0xff] }
  0x29   : > { %345 = vst [vmem:[#allocation2 + $0x8] sm:$0xff] %v313_v14  ;;  %v316_v17 = vld [vmem:[%s4495_s0 + $0x88] sm:$0xff]  ;;  %346 = vst [vmem:[#allocation2 + $0x78] sm:$0xff] %v314_v15  ;;  %v317_v18 = vld [vmem:[%s4495_s0 + $0x90] sm:$0xff] }
  0x2a   : > { %347 = vst [vmem:[#allocation2 + $0x38] sm:$0xff] %v315_v16  ;;  %348 = vst [vmem:[#allocation2 + $0x58] sm:$0xff] %v316_v17  ;;  %v318_v19 = vld [vmem:[%s4495_s0 + $0x98] sm:$0xff]  ;;  %v319_v20 = vld [vmem:[%s4495_s0 + $0xa0] sm:$0xff] }
  0x2b   : > { %349 = vst [vmem:[#allocation2 + $0x40] sm:$0xff] %v317_v18  ;;  %350 = vst [vmem:[#allocation2 + $0xc8] sm:$0xff] %v318_v19  ;;  %v320_v21 = vld [vmem:[%s4495_s0 + $0xa8] sm:$0xff]  ;;  %v321_v22 = vld [vmem:[%s4495_s0 + $0xb0] sm:$0xff] }
  0x2c   : > { %351 = vst [vmem:[#allocation2 + $0xe0] sm:$0xff] %v319_v20  ;;  %v322_v23 = vld [vmem:[%s4495_s0 + $0xb8] sm:$0xff]  ;;  %352 = vst [vmem:[#allocation2 + $0x90] sm:$0xff] %v320_v21  ;;  %v323_v24 = vld [vmem:[%s4495_s0 + $0xc0] sm:$0xff] }
  0x2d   : > { %353 = vst [vmem:[#allocation2 + $0x70] sm:$0xff] %v321_v22  ;;  %354 = vst [vmem:[#allocation2 + $0xc0] sm:$0xff] %v322_v23  ;;  %v324_v25 = vld [vmem:[%s4495_s0 + $0xc8] sm:$0xff]  ;;  %v325_v26 = vld [vmem:[%s4495_s0 + $0xd0] sm:$0xff] }
  0x2e   : > { %355 = vst [vmem:[#allocation2 + $0xa8] sm:$0xff] %v323_v24  ;;  %356 = vst [vmem:[#allocation2 + $0xd0] sm:$0xff] %v324_v25  ;;  %v326_v27 = vld [vmem:[%s4495_s0 + $0xd8] sm:$0xff]  ;;  %v327_v28 = vld [vmem:[%s4495_s0 + $0xe0] sm:$0xff] }
  0x2f   : > { %357 = vst [vmem:[#allocation2 + $0x10] sm:$0xff] %v325_v26  ;;  %v328_v29 = vld [vmem:[%s4495_s0 + $0xe8] sm:$0xff]  ;;  %358 = vst [vmem:[#allocation2 + $0x28] sm:$0xff] %v326_v27  ;;  %v329_v30 = vld [vmem:[%s4495_s0 + $0xf0] sm:$0xff] }
  0x30   : > { %359 = vst [vmem:[#allocation2 + $0xa0] sm:$0xff] %v327_v28  ;;  %360 = vst [vmem:[#allocation2 + $0xf8] sm:$0xff] %v328_v29  ;;  %v330_v31 = vld [vmem:[%s4495_s0 + $0xf8] sm:$0xff] }
  0x31   : > { %361 = vst [vmem:[#allocation2 + $0x20] sm:$0xff] %v329_v30  ;;  %362 = vst [vmem:[#allocation2 + $0x98] sm:$0xff] %v330_v31 }
  0x32 PF: > { %p2812_p12 = scmp.le.s32.totalorder %s3178_s25, 0 }
  0x34   : > { %366 = sbr.rel (%p2812_p12) target bundleno = 317 (0x13d), region = 44 }
  0x39   : > { %v436_v32 = vld [vmem:[%s3214_s16 + $0x1e8] sm:$0xff]  ;;  %v438_v33 = vld [vmem:[%s3214_s16 + $0x1f8] sm:$0xff]  ;;  %v435_v34 = vld [vmem:[%s3214_s16 + $0x1e0] sm:$0xff] }
  0x3a   : > { %461 = vmatprep.subr.mxu0 %v436_v32  ;;  %574 = vmatprep.subr.mxu1 %v438_v33  ;;  %v437_v35 = vld [vmem:[%s3214_s16 + $0x1f0] sm:$0xff]  ;;  %v432_v36 = vld [vmem:[%s3214_s16 + $0x1c8] sm:$0xff]  ;;  %v434_v37 = vld [vmem:[%s3214_s16 + $0x1d8] sm:$0xff]  ;;  %v3118_v33 = vmov 0.0  }
  0x3b   : > { %462 = vmatpush1.msra.mxu0 %v435_v34  ;;  %575 = vmatpush1.msra.mxu1 %v437_v35  ;;  %v431_v38 = vld [vmem:[%s3214_s16 + $0x1c0] sm:$0xff]  ;;  %v433_v39 = vld [vmem:[%s3214_s16 + $0x1d0] sm:$0xff]  ;;  %v428_v40 = vld [vmem:[%s3214_s16 + $0x1a8] sm:$0xff] }
  0x3c   : > { %463 = vmatprep.subr.mxu0 %v432_v36  ;;  %576 = vmatprep.subr.mxu1 %v434_v37  ;;  %v430_v41 = vld [vmem:[%s3214_s16 + $0x1b8] sm:$0xff]  ;;  %v427_v42 = vld [vmem:[%s3214_s16 + $0x1a0] sm:$0xff]  ;;  %v429_v43 = vld [vmem:[%s3214_s16 + $0x1b0] sm:$0xff] }
  0x3d   : > { %464 = vmatpush1.msra.mxu0 %v431_v38  ;;  %577 = vmatpush1.msra.mxu1 %v433_v39  ;;  %v424_v44 = vld [vmem:[%s3214_s16 + $0x188] sm:$0xff]  ;;  %v426_v45 = vld [vmem:[%s3214_s16 + $0x198] sm:$0xff]  ;;  %v423_v46 = vld [vmem:[%s3214_s16 + $0x180] sm:$0xff] }
  0x3e   : > { %465 = vmatprep.subr.mxu0 %v428_v40  ;;  %578 = vmatprep.subr.mxu1 %v430_v41  ;;  %v425_v47 = vld [vmem:[%s3214_s16 + $0x190] sm:$0xff]  ;;  %v420_v48 = vld [vmem:[%s3214_s16 + $0x168] sm:$0xff]  ;;  %v422_v49 = vld [vmem:[%s3214_s16 + $0x178] sm:$0xff]  ;;  %v441_v41 = vlaneseq }
  0x3f   : > { %466 = vmatpush1.msra.mxu0 %v427_v42  ;;  %579 = vmatpush1.msra.mxu1 %v429_v43  ;;  %v419_v50 = vld [vmem:[%s3214_s16 + $0x160] sm:$0xff]  ;;  %v421_v51 = vld [vmem:[%s3214_s16 + $0x170] sm:$0xff]  ;;  %v416_v52 = vld [vmem:[%s3214_s16 + $0x148] sm:$0xff] }
  0x40   : > { %467 = vmatprep.subr.mxu0 %v424_v44  ;;  %580 = vmatprep.subr.mxu1 %v426_v45  ;;  %v418_v53 = vld [vmem:[%s3214_s16 + $0x158] sm:$0xff]  ;;  %v415_v54 = vld [vmem:[%s3214_s16 + $0x140] sm:$0xff]  ;;  %v417_v55 = vld [vmem:[%s3214_s16 + $0x150] sm:$0xff]  ;;  %v442_v42 = vshrl.u32 %v441_v41, 7 }
  0x41   : > { %468 = vmatpush1.msra.mxu0 %v423_v46  ;;  %581 = vmatpush1.msra.mxu1 %v425_v47  ;;  %v412_v56 = vld [vmem:[%s3214_s16 + $0x128] sm:$0xff]  ;;  %v414_v57 = vld [vmem:[%s3214_s16 + $0x138] sm:$0xff]  ;;  %v411_v58 = vld [vmem:[%s3214_s16 + $0x120] sm:$0xff] }
  0x42   : > { %469 = vmatprep.subr.mxu0 %v420_v48  ;;  %582 = vmatprep.subr.mxu1 %v422_v49  ;;  %v413_v59 = vld [vmem:[%s3214_s16 + $0x130] sm:$0xff]  ;;  %v408_v60 = vld [vmem:[%s3214_s16 + $0x108] sm:$0xff]  ;;  %v410_v61 = vld [vmem:[%s3214_s16 + $0x118] sm:$0xff]  ;;  %v443_v43 = vsub.s32 0, %v442_v42  ;;  %v451_v44 = vsub.s32 2, %v442_v42  ;;  %v447_v46 = vsub.s32 1, %v442_v42 }
  0x43   : > { %470 = vmatpush1.msra.mxu0 %v419_v50  ;;  %583 = vmatpush1.msra.mxu1 %v421_v51  ;;  %v407_v62 = vld [vmem:[%s3214_s16 + $0x100] sm:$0xff]  ;;  %v409_v63 = vld [vmem:[%s3214_s16 + $0x110] sm:$0xff]  ;;  %v404_v0 = vld [vmem:[%s3214_s16 + $0xe8] sm:$0xff]  ;;  %v455_v47 = vsub.s32 3, %v442_v42 }
  0x44   : > { %471 = vmatprep.subr.mxu0 %v416_v52  ;;  %584 = vmatprep.subr.mxu1 %v418_v53  ;;  %v406_v1 = vld [vmem:[%s3214_s16 + $0xf8] sm:$0xff]  ;;  %v403_v2 = vld [vmem:[%s3214_s16 + $0xe0] sm:$0xff]  ;;  %v405_v3 = vld [vmem:[%s3214_s16 + $0xf0] sm:$0xff] }
  0x45   : > { %472 = vmatpush1.msra.mxu0 %v415_v54  ;;  %585 = vmatpush1.msra.mxu1 %v417_v55  ;;  %v400_v4 = vld [vmem:[%s3214_s16 + $0xc8] sm:$0xff]  ;;  %v402_v5 = vld [vmem:[%s3214_s16 + $0xd8] sm:$0xff]  ;;  %v399_v6 = vld [vmem:[%s3214_s16 + $0xc0] sm:$0xff] }
  0x46   : > { %473 = vmatprep.subr.mxu0 %v412_v56  ;;  %586 = vmatprep.subr.mxu1 %v414_v57  ;;  %v401_v7 = vld [vmem:[%s3214_s16 + $0xd0] sm:$0xff]  ;;  %v396_v8 = vld [vmem:[%s3214_s16 + $0xa8] sm:$0xff]  ;;  %v398_v9 = vld [vmem:[%s3214_s16 + $0xb8] sm:$0xff] }
  0x47   : > { %474 = vmatpush1.msra.mxu0 %v411_v58  ;;  %587 = vmatpush1.msra.mxu1 %v413_v59  ;;  %v395_v10 = vld [vmem:[%s3214_s16 + $0xa0] sm:$0xff]  ;;  %v397_v11 = vld [vmem:[%s3214_s16 + $0xb0] sm:$0xff]  ;;  %v392_v12 = vld [vmem:[%s3214_s16 + $0x88] sm:$0xff] }
  0x48   : > { %475 = vmatprep.subr.mxu0 %v408_v60  ;;  %588 = vmatprep.subr.mxu1 %v410_v61  ;;  %v394_v13 = vld [vmem:[%s3214_s16 + $0x98] sm:$0xff]  ;;  %v391_v14 = vld [vmem:[%s3214_s16 + $0x80] sm:$0xff]  ;;  %v393_v15 = vld [vmem:[%s3214_s16 + $0x90] sm:$0xff] }
  0x49   : > { %476 = vmatpush1.msra.mxu0 %v407_v62  ;;  %589 = vmatpush1.msra.mxu1 %v409_v63  ;;  %v388_v16 = vld [vmem:[%s3214_s16 + $0x68] sm:$0xff]  ;;  %v390_v17 = vld [vmem:[%s3214_s16 + $0x78] sm:$0xff]  ;;  %v387_v18 = vld [vmem:[%s3214_s16 + $0x60] sm:$0xff] }
  0x4a   : > { %477 = vmatprep.subr.mxu0 %v404_v0  ;;  %590 = vmatprep.subr.mxu1 %v406_v1  ;;  %v389_v19 = vld [vmem:[%s3214_s16 + $0x70] sm:$0xff]  ;;  %v384_v20 = vld [vmem:[%s3214_s16 + $0x48] sm:$0xff]  ;;  %v386_v21 = vld [vmem:[%s3214_s16 + $0x58] sm:$0xff] }
  0x4b   : > { %478 = vmatpush1.msra.mxu0 %v403_v2  ;;  %591 = vmatpush1.msra.mxu1 %v405_v3  ;;  %v383_v22 = vld [vmem:[%s3214_s16 + $0x40] sm:$0xff]  ;;  %v385_v23 = vld [vmem:[%s3214_s16 + $0x50] sm:$0xff]  ;;  %v380_v24 = vld [vmem:[%s3214_s16 + $0x28] sm:$0xff] }
  0x4c   : > { %479 = vmatprep.subr.mxu0 %v400_v4  ;;  %592 = vmatprep.subr.mxu1 %v402_v5  ;;  %v382_v25 = vld [vmem:[%s3214_s16 + $0x38] sm:$0xff]  ;;  %v379_v26 = vld [vmem:[%s3214_s16 + $0x20] sm:$0xff]  ;;  %v381_v27 = vld [vmem:[%s3214_s16 + $0x30] sm:$0xff] }
  0x4d   : > { %480 = vmatpush1.msra.mxu0 %v399_v6  ;;  %593 = vmatpush1.msra.mxu1 %v401_v7  ;;  %v376_v28 = vld [vmem:[%s3214_s16 + $0x8] sm:$0xff]  ;;  %v378_v29 = vld [vmem:[%s3214_s16 + $0x18] sm:$0xff]  ;;  %v375_v30 = vld [vmem:[%s3214_s16] sm:$0xff] }
  0x4e   : > { %481 = vmatprep.subr.mxu0 %v396_v8  ;;  %594 = vmatprep.subr.mxu1 %v398_v9  ;;  %v377_v31 = vld [vmem:[%s3214_s16 + $0x10] sm:$0xff]  ;;  %v367_v32 = vld [vmem:[%s4499_s4] sm:$0xff]  ;;  %v368_v34 = vld [vmem:[%s4499_s4 + $0x8] sm:$0xff] }
  0x4f   : > { %482 = vmatpush1.msra.mxu0 %v395_v10  ;;  %595 = vmatpush1.msra.mxu1 %v397_v11  ;;  %v369_v35 = vld [vmem:[%s4499_s4 + $0x10] sm:$0xff]  ;;  %v370_v36 = vld [vmem:[%s4499_s4 + $0x18] sm:$0xff]  ;;  %v371_v37 = vld [vmem:[%s4499_s4 + $0x20] sm:$0xff] }
  0x50   : > { %483 = vmatprep.subr.mxu0 %v392_v12  ;;  %596 = vmatprep.subr.mxu1 %v394_v13  ;;  %v372_v38 = vld [vmem:[%s4499_s4 + $0x28] sm:$0xff]  ;;  %v373_v39 = vld [vmem:[%s4499_s4 + $0x30] sm:$0xff]  ;;  %v374_v40 = vld [vmem:[%s4499_s4 + $0x38] sm:$0xff] }
  0x51   : > { %484 = vmatpush1.msra.mxu0 %v391_v14  ;;  %597 = vmatpush1.msra.mxu1 %v393_v15  ;;  %v439_v45 = vld [vmem:[%s3224_s28] sm:$0xf] }
  0x52   : > { %485 = vmatprep.subr.mxu0 %v388_v16  ;;  %598 = vmatprep.subr.mxu1 %v390_v17  ;;  %v3417_v48 = vrot.slane %v439_v45, %v443_v43  ;;  %v3419_v49 = vrot.slane %v439_v45, %v451_v44  ;;  %v3421_v50 = vrot.slane %v439_v45, %v447_v46 }
  0x53   : > { %486 = vmatpush1.msra.mxu0 %v387_v18  ;;  %599 = vmatpush1.msra.mxu1 %v389_v19  ;;  %v3423_v51 = vrot.slane %v439_v45, %v455_v47 }
  0x54   : > { %487 = vmatprep.subr.mxu0 %v384_v20  ;;  %600 = vmatprep.subr.mxu1 %v386_v21 }
  0x55   : > { %488 = vmatpush1.msra.mxu0 %v383_v22  ;;  %601 = vmatpush1.msra.mxu1 %v385_v23 }
  0x56   : > { %489 = vmatprep.subr.mxu0 %v380_v24  ;;  %602 = vmatprep.subr.mxu1 %v382_v25 }
  0x57   : > { %490 = vmatpush1.msra.mxu0 %v379_v26  ;;  %603 = vmatpush1.msra.mxu1 %v381_v27 }
  0x58   : > { %491 = vmatprep.subr.mxu0 %v376_v28  ;;  %604 = vmatprep.subr.mxu1 %v378_v29 }
  0x59   : > { %492 = vmatpush1.msra.mxu0 %v375_v30  ;;  %525 = vmatprep.mubr.f32.mxu0 %v3118_v33 }
  0x5a   : > { %605 = vmatpush1.msra.mxu1 %v377_v31  ;;  %638 = vmatprep.mubr.f32.mxu1 %v3118_v33 }
  0x5b   : > { %526 = vmatmul.mubr.f32.vlgmr.msra.gmra.mxu0 %v367_v32  ;;  %639 = vmatmul.mubr.f32.vlgmr.msra.gmra.mxu1 %v367_v32 }
  0x5c   : > { %531 = vmatprep.mubr.f32.mxu0 %v3118_v33  ;;  %644 = vmatprep.mubr.f32.mxu1 %v3118_v33 }
  0x5f   : > { %532 = vmatmul.mubr.f32.gmra.mxu0 %v368_v34  ;;  %645 = vmatmul.mubr.f32.gmra.mxu1 %v368_v34 }
  0x60   : > { %537 = vmatprep.mubr.f32.mxu0 %v3118_v33  ;;  %650 = vmatprep.mubr.f32.mxu1 %v3118_v33 }
  0x63   : > { %538 = vmatmul.mubr.f32.gmra.mxu0 %v369_v35  ;;  %651 = vmatmul.mubr.f32.gmra.mxu1 %v369_v35 }
  0x64   : > { %543 = vmatprep.mubr.f32.mxu0 %v3118_v33  ;;  %656 = vmatprep.mubr.f32.mxu1 %v3118_v33 }
  0x67   : > { %544 = vmatmul.mubr.f32.gmra.mxu0 %v370_v36  ;;  %657 = vmatmul.mubr.f32.gmra.mxu1 %v370_v36 }
  0x68   : > { %549 = vmatprep.mubr.f32.mxu0 %v3118_v33  ;;  %662 = vmatprep.mubr.f32.mxu1 %v3118_v33 }
  0x6b   : > { %550 = vmatmul.mubr.f32.gmra.mxu0 %v371_v37  ;;  %663 = vmatmul.mubr.f32.gmra.mxu1 %v371_v37 }
  0x6c   : > { %555 = vmatprep.mubr.f32.mxu0 %v3118_v33  ;;  %668 = vmatprep.mubr.f32.mxu1 %v3118_v33 }
  0x6f   : > { %556 = vmatmul.mubr.f32.gmra.mxu0 %v372_v38  ;;  %669 = vmatmul.mubr.f32.gmra.mxu1 %v372_v38 }
  0x70   : > { %561 = vmatprep.mubr.f32.mxu0 %v3118_v33  ;;  %674 = vmatprep.mubr.f32.mxu1 %v3118_v33 }
  0x73   : > { %562 = vmatmul.mubr.f32.gmra.mxu0 %v373_v39  ;;  %675 = vmatmul.mubr.f32.gmra.mxu1 %v373_v39 }
  0x74   : > { %567 = vmatprep.mubr.f32.mxu0 %v3118_v33  ;;  %680 = vmatprep.mubr.f32.mxu1 %v3118_v33 }
  0x77   : > { %568 = vmatmul.mubr.f32.gmra.mxu0 %v374_v40  ;;  %681 = vmatmul.mubr.f32.gmra.mxu1 %v374_v40 }
 0x11b   : > { %v527_v52 = vpop.f32.mrf.mxu0  ;;  %v640_v53 = vpop.f32.mrf.mxu1 }
 0x11c   : > { %v528_v54 = vadd.f32 %v527_v52, %v3417_v48  ;;  %v641_v55 = vadd.f32 %v640_v53, %v3419_v49 }
 0x11d   : > { %v529_v56 = vpop.f32.mrf.mxu0  ;;  %v642_v57 = vpop.f32.mrf.mxu1 }
 0x11e   : > { %687 = vst [vmem:[#allocation2 + $0xb0] sm:$0xff] %v528_v54  ;;  %689 = vst [vmem:[#allocation2 + $0xd8] sm:$0xff] %v641_v55  ;;  %v530_v58 = vadd.f32 %v529_v56, %v3421_v50  ;;  %v643_v59 = vadd.f32 %v642_v57, %v3423_v51 }
 0x11f   : > { %v533_v60 = vpop.f32.mrf.mxu0  ;;  %v646_v61 = vpop.f32.mrf.mxu1 }
 0x120   : > { %688 = vst [vmem:[#allocation2] sm:$0xff] %v530_v58  ;;  %690 = vst [vmem:[#allocation2 + $0x18] sm:$0xff] %v643_v59  ;;  %v534_v62 = vadd.f32 %v533_v60, %v3417_v48  ;;  %v647_v63 = vadd.f32 %v646_v61, %v3419_v49 }
 0x121   : > { %v535_v0 = vpop.f32.mrf.mxu0  ;;  %v648_v1 = vpop.f32.mrf.mxu1 }
 0x122   : > { %691 = vst [vmem:[#allocation2 + $0x50] sm:$0xff] %v534_v62  ;;  %693 = vst [vmem:[#allocation2 + $0x30] sm:$0xff] %v647_v63  ;;  %v536_v2 = vadd.f32 %v535_v0, %v3421_v50  ;;  %v649_v3 = vadd.f32 %v648_v1, %v3423_v51 }
 0x123   : > { %v539_v4 = vpop.f32.mrf.mxu0  ;;  %v652_v5 = vpop.f32.mrf.mxu1 }
 0x124   : > { %692 = vst [vmem:[#allocation2 + $0x68] sm:$0xff] %v536_v2  ;;  %694 = vst [vmem:[#allocation2 + $0x48] sm:$0xff] %v649_v3  ;;  %v540_v6 = vadd.f32 %v539_v4, %v3417_v48  ;;  %v653_v7 = vadd.f32 %v652_v5, %v3419_v49 }
 0x125   : > { %v541_v8 = vpop.f32.mrf.mxu0  ;;  %v654_v9 = vpop.f32.mrf.mxu1 }
 0x126   : > { %695 = vst [vmem:[#allocation2 + $0x80] sm:$0xff] %v540_v6  ;;  %697 = vst [vmem:[#allocation2 + $0xe8] sm:$0xff] %v653_v7  ;;  %v542_v10 = vadd.f32 %v541_v8, %v3421_v50  ;;  %v655_v11 = vadd.f32 %v654_v9, %v3423_v51 }
 0x127   : > { %v545_v12 = vpop.f32.mrf.mxu0  ;;  %v658_v13 = vpop.f32.mrf.mxu1 }
 0x128   : > { %696 = vst [vmem:[#allocation2 + $0x88] sm:$0xff] %v542_v10  ;;  %698 = vst [vmem:[#allocation2 + $0xb8] sm:$0xff] %v655_v11  ;;  %v546_v14 = vadd.f32 %v545_v12, %v3417_v48  ;;  %v659_v15 = vadd.f32 %v658_v13, %v3419_v49 }
 0x129   : > { %v547_v16 = vpop.f32.mrf.mxu0  ;;  %v660_v17 = vpop.f32.mrf.mxu1 }
 0x12a   : > { %699 = vst [vmem:[#allocation2 + $0x60] sm:$0xff] %v546_v14  ;;  %701 = vst [vmem:[#allocation2 + $0x8] sm:$0xff] %v659_v15  ;;  %v548_v18 = vadd.f32 %v547_v16, %v3421_v50  ;;  %v661_v19 = vadd.f32 %v660_v17, %v3423_v51 }
 0x12b   : > { %v551_v20 = vpop.f32.mrf.mxu0  ;;  %v664_v21 = vpop.f32.mrf.mxu1 }
 0x12c   : > { %700 = vst [vmem:[#allocation2 + $0xf0] sm:$0xff] %v548_v18  ;;  %702 = vst [vmem:[#allocation2 + $0x78] sm:$0xff] %v661_v19  ;;  %v552_v22 = vadd.f32 %v551_v20, %v3417_v48  ;;  %v665_v23 = vadd.f32 %v664_v21, %v3419_v49 }
 0x12d   : > { %v553_v24 = vpop.f32.mrf.mxu0  ;;  %v666_v25 = vpop.f32.mrf.mxu1 }
 0x12e   : > { %703 = vst [vmem:[#allocation2 + $0x38] sm:$0xff] %v552_v22  ;;  %705 = vst [vmem:[#allocation2 + $0x40] sm:$0xff] %v665_v23  ;;  %v554_v26 = vadd.f32 %v553_v24, %v3421_v50  ;;  %v667_v27 = vadd.f32 %v666_v25, %v3423_v51 }
 0x12f   : > { %v557_v28 = vpop.f32.mrf.mxu0  ;;  %v670_v29 = vpop.f32.mrf.mxu1 }
 0x130   : > { %704 = vst [vmem:[#allocation2 + $0x58] sm:$0xff] %v554_v26  ;;  %706 = vst [vmem:[#allocation2 + $0xc8] sm:$0xff] %v667_v27  ;;  %v558_v30 = vadd.f32 %v557_v28, %v3417_v48  ;;  %v671_v31 = vadd.f32 %v670_v29, %v3419_v49 }
 0x131   : > { %v559_v32 = vpop.f32.mrf.mxu0  ;;  %v672_v33 = vpop.f32.mrf.mxu1 }
 0x132   : > { %707 = vst [vmem:[#allocation2 + $0xe0] sm:$0xff] %v558_v30  ;;  %709 = vst [vmem:[#allocation2 + $0x70] sm:$0xff] %v671_v31  ;;  %v560_v34 = vadd.f32 %v559_v32, %v3421_v50  ;;  %v673_v35 = vadd.f32 %v672_v33, %v3423_v51 }
 0x133   : > { %v563_v36 = vpop.f32.mrf.mxu0  ;;  %v676_v37 = vpop.f32.mrf.mxu1 }
 0x134   : > { %708 = vst [vmem:[#allocation2 + $0x90] sm:$0xff] %v560_v34  ;;  %710 = vst [vmem:[#allocation2 + $0xc0] sm:$0xff] %v673_v35  ;;  %v564_v38 = vadd.f32 %v563_v36, %v3417_v48  ;;  %v677_v39 = vadd.f32 %v676_v37, %v3419_v49 }
 0x135   : > { %v565_v40 = vpop.f32.mrf.mxu0  ;;  %v678_v41 = vpop.f32.mrf.mxu1 }
 0x136   : > { %711 = vst [vmem:[#allocation2 + $0xa8] sm:$0xff] %v564_v38  ;;  %713 = vst [vmem:[#allocation2 + $0x10] sm:$0xff] %v677_v39  ;;  %v566_v42 = vadd.f32 %v565_v40, %v3421_v50  ;;  %v679_v43 = vadd.f32 %v678_v41, %v3423_v51 }
 0x137   : > { %v569_v44 = vpop.f32.mrf.mxu0  ;;  %v682_v45 = vpop.f32.mrf.mxu1 }
 0x138   : > { %712 = vst [vmem:[#allocation2 + $0xd0] sm:$0xff] %v566_v42  ;;  %714 = vst [vmem:[#allocation2 + $0x28] sm:$0xff] %v679_v43  ;;  %v570_v46 = vadd.f32 %v569_v44, %v3417_v48  ;;  %v683_v47 = vadd.f32 %v682_v45, %v3419_v49 }
 0x139   : > { %v571_v52 = vpop.f32.mrf.mxu0  ;;  %v684_v53 = vpop.f32.mrf.mxu1 }
 0x13a   : > { %715 = vst [vmem:[#allocation2 + $0xa0] sm:$0xff] %v570_v46  ;;  %717 = vst [vmem:[#allocation2 + $0x20] sm:$0xff] %v683_v47  ;;  %v572_v54 = vadd.f32 %v571_v52, %v3421_v50  ;;  %v685_v55 = vadd.f32 %v684_v53, %v3423_v51 }
 0x13c   : > { %716 = vst [vmem:[#allocation2 + $0xf8] sm:$0xff] %v572_v54  ;;  %718 = vst [vmem:[#allocation2 + $0x98] sm:$0xff] %v685_v55 }
 0x13d PF: > { %v3458_v48 = vld [vmem:[%s3219_s19 + $0x1e8] sm:$0xff]  ;;  %v3461_v49 = vld [vmem:[%s3219_s19 + $0x1e0] sm:$0xff]  ;;  %v4504_v51 = vmov 0.0   ;;  %v3489_v61 = vld [vmem:[%s3219_s19 + $0x1f8] sm:$0xff]  ;;  %s2846_s20 = sshll.u32 %s3178_s25, 7  ;;  %s2682_s26 = sshll.u32 %s3228_s30, 4  ;;  %s4425_s26 = int_to_ptr.vmem [resolvable:$true] %s2682_s26 }
 0x13e   : > { %4579 = vst [vmem:[#allocation10_spill] sm:$0xff] %v3458_v48  ;;  %v3464_v56 = vld [vmem:[%s3219_s19 + $0x1c8] sm:$0xff]  ;;  %787 = vmatprep.subr.mxu0 %v3458_v48  ;;  %v3468_v50 = vld [vmem:[%s3219_s19 + $0x1c0] sm:$0xff]  ;;  %851 = vmatprep.mubr.f32.mxu0 %v4504_v51  ;;  %4580 = vst [vmem:[#allocation11_spill] sm:$0xff] %v3489_v61  ;;  %s4423_s15 = scalar_lea.hbm %s4501_s6, %s2846_s20  ;;  %s2653_s17 = scalar_lea.sflag [#allocation6], %s3206_s9 }
 0x13f   : > { %788 = vmatpush1.msra.mxu0 %v3461_v49  ;;  %v3473_v57 = vld [vmem:[%s3219_s19 + $0x1a8] sm:$0xff]  ;;  %922 = vmatprep.mubr.f32.mxu1 %v4504_v51  ;;  %v3478_v58 = vld [vmem:[%s3219_s19 + $0x1a0] sm:$0xff]  ;;  %v3497_v63 = vld [vmem:[%s3219_s19 + $0x1f0] sm:$0xff]  ;;  %s3026_s12 = scalar_lea.vmem %s4425_s26, 128  ;;  %s3120_s18 = smov [#allocation5]  }
 0x140   : > { %789 = vmatprep.subr.mxu0 %v3464_v56  ;;  %v3482_v59 = vld [vmem:[%s3219_s19 + $0x188] sm:$0xff]  ;;  %v3486_v60 = vld [vmem:[%s3219_s19 + $0x180] sm:$0xff]  ;;  %858 = vmatprep.subr.mxu1 %v3489_v61  ;;  %v3505_v1 = vld [vmem:[%s3219_s19 + $0x1d8] sm:$0xff]  ;;  %p3027_p13 = scmp.ne.s32.totalorder %s4425_s26, %s3026_s12  ;;  %s3030_s10 = sshll.u32 %s3120_s18, 4  ;;  %s3031_s10 = int_to_ptr.vmem [resolvable:$false] %s3030_s10 }
 0x141   : > { %790 = vmatpush1.msra.mxu0 %v3468_v50  ;;  %v3493_v62 = vld [vmem:[%s3219_s19 + $0x168] sm:$0xff]  ;;  %v3501_v0 = vld [vmem:[%s3219_s19 + $0x160] sm:$0xff]  ;;  %859 = vmatpush1.msra.mxu1 %v3497_v63  ;;  %v3508_v2 = vld [vmem:[%s3219_s19 + $0x1d0] sm:$0xff]  ;;  %s3032_s13 = scalar_lea.vmem %s3031_s10, 256  ;;  %p3033_p2 = scmp.lt.s32.totalorder %s4425_s26, %s3031_s10 }
 0x142   : > { %791 = vmatprep.subr.mxu0 %v3473_v57  ;;  %v3512_v3 = vld [vmem:[%s3219_s19 + $0x148] sm:$0xff]  ;;  %860 = vmatprep.subr.mxu1 %v3505_v1  ;;  %v3516_v4 = vld [vmem:[%s3219_s19 + $0x1b8] sm:$0xff]  ;;  %v3520_v5 = vld [vmem:[%s3219_s19 + $0x140] sm:$0xff]  ;;  %p3028_p0 = pnand %p3027_p13, %p3195_p5  ;;  %p3034_p3 = scmp.lt.s32.totalorder %s3032_s13, %s3026_s12 }
 0x143   : > { %792 = vmatpush1.msra.mxu0 %v3478_v58  ;;  %861 = vmatpush1.msra.mxu1 %v3508_v2  ;;  %v3524_v6 = vld [vmem:[%s3219_s19 + $0x1b0] sm:$0xff]  ;;  %v3527_v7 = vld [vmem:[%s3219_s19 + $0x198] sm:$0xff]  ;;  %v3531_v8 = vld [vmem:[%s3219_s19 + $0x128] sm:$0xff] }
 0x144   : > { %793 = vmatprep.subr.mxu0 %v3482_v59  ;;  %862 = vmatprep.subr.mxu1 %v3516_v4  ;;  %v3535_v9 = vld [vmem:[%s3219_s19 + $0x190] sm:$0xff]  ;;  %v3539_v10 = vld [vmem:[%s3219_s19 + $0x120] sm:$0xff]  ;;  %v3543_v11 = vld [vmem:[%s3219_s19 + $0x178] sm:$0xff]  ;;  %p3029_p1 = pneg %p3028_p0  ;;  %p3035_p4 = por %p3034_p3, %p3033_p2 }
 0x145   : > { %794 = vmatpush1.msra.mxu0 %v3486_v60  ;;  %863 = vmatpush1.msra.mxu1 %v3524_v6  ;;  %v3547_v12 = vld [vmem:[%s3219_s19 + $0x108] sm:$0xff]  ;;  %v3551_v13 = vld [vmem:[%s3219_s19 + $0x170] sm:$0xff]  ;;  %v3555_v14 = vld [vmem:[%s3219_s19 + $0x100] sm:$0xff] }
 0x146   : > { %795 = vmatprep.subr.mxu0 %v3493_v62  ;;  %864 = vmatprep.subr.mxu1 %v3527_v7  ;;  %v3559_v15 = vld [vmem:[%s3219_s19 + $0x158] sm:$0xff]  ;;  %v3563_v16 = vld [vmem:[%s3219_s19 + $0xe8] sm:$0xff]  ;;  %v3567_v17 = vld [vmem:[%s3219_s19 + $0x150] sm:$0xff]  ;;  %p3036_p7 = pnand %p3035_p4, %p3029_p1 }
 0x147   : > { %796 = vmatpush1.msra.mxu0 %v3501_v0  ;;  %865 = vmatpush1.msra.mxu1 %v3535_v9  ;;  %v3571_v18 = vld [vmem:[%s3219_s19 + $0xe0] sm:$0xff]  ;;  %v3575_v19 = vld [vmem:[%s3219_s19 + $0x138] sm:$0xff]  ;;  %v3579_v20 = vld [vmem:[%s3219_s19 + $0xc8] sm:$0xff] }
 0x148   : > { %797 = vmatprep.subr.mxu0 %v3512_v3  ;;  %866 = vmatprep.subr.mxu1 %v3543_v11  ;;  %v3583_v21 = vld [vmem:[%s3219_s19 + $0x130] sm:$0xff]  ;;  %v3587_v22 = vld [vmem:[%s3219_s19 + $0xc0] sm:$0xff]  ;;  %v3591_v23 = vld [vmem:[%s3219_s19 + $0x118] sm:$0xff] }
 0x149   : > { %798 = vmatpush1.msra.mxu0 %v3520_v5  ;;  %867 = vmatpush1.msra.mxu1 %v3551_v13  ;;  %v3595_v24 = vld [vmem:[%s3219_s19 + $0xa8] sm:$0xff]  ;;  %v3599_v25 = vld [vmem:[%s3219_s19 + $0x110] sm:$0xff]  ;;  %v3603_v26 = vld [vmem:[%s3219_s19 + $0xa0] sm:$0xff] }
 0x14a   : > { %799 = vmatprep.subr.mxu0 %v3531_v8  ;;  %868 = vmatprep.subr.mxu1 %v3559_v15  ;;  %v3607_v27 = vld [vmem:[%s3219_s19 + $0xf8] sm:$0xff]  ;;  %v3611_v28 = vld [vmem:[%s3219_s19 + $0x88] sm:$0xff]  ;;  %v3615_v29 = vld [vmem:[%s3219_s19 + $0xf0] sm:$0xff] }
 0x14b   : > { %800 = vmatpush1.msra.mxu0 %v3539_v10  ;;  %869 = vmatpush1.msra.mxu1 %v3567_v17  ;;  %v3619_v30 = vld [vmem:[%s3219_s19 + $0x80] sm:$0xff]  ;;  %v3623_v31 = vld [vmem:[%s3219_s19 + $0xd8] sm:$0xff]  ;;  %v3627_v32 = vld [vmem:[%s3219_s19 + $0x68] sm:$0xff] }
 0x14c   : > { %801 = vmatprep.subr.mxu0 %v3547_v12  ;;  %870 = vmatprep.subr.mxu1 %v3575_v19  ;;  %4581 = vst [vmem:[#allocation12_spill] sm:$0xff] %v3627_v32  ;;  %v3631_v33 = vld [vmem:[%s3219_s19 + $0xd0] sm:$0xff]  ;;  %v3635_v34 = vld [vmem:[%s3219_s19 + $0x60] sm:$0xff]  ;;  %v3639_v35 = vld [vmem:[%s3219_s19 + $0xb8] sm:$0xff] }
 0x14d   : > { %802 = vmatpush1.msra.mxu0 %v3555_v14  ;;  %871 = vmatpush1.msra.mxu1 %v3583_v21  ;;  %4582 = vst [vmem:[#allocation13_spill] sm:$0xff] %v3635_v34  ;;  %v3643_v36 = vld [vmem:[%s3219_s19 + $0x48] sm:$0xff]  ;;  %v3647_v37 = vld [vmem:[%s3219_s19 + $0xb0] sm:$0xff]  ;;  %v3651_v38 = vld [vmem:[%s3219_s19 + $0x40] sm:$0xff] }
 0x14e   : > { %803 = vmatprep.subr.mxu0 %v3563_v16  ;;  %872 = vmatprep.subr.mxu1 %v3591_v23  ;;  %4583 = vst [vmem:[#allocation14_spill] sm:$0xff] %v3643_v36  ;;  %4584 = vst [vmem:[#allocation15_spill] sm:$0xff] %v3651_v38  ;;  %v3655_v39 = vld [vmem:[%s3219_s19 + $0x98] sm:$0xff]  ;;  %v3659_v40 = vld [vmem:[%s3219_s19 + $0x28] sm:$0xff] }
 0x14f   : > { %804 = vmatpush1.msra.mxu0 %v3571_v18  ;;  %873 = vmatpush1.msra.mxu1 %v3599_v25  ;;  %4585 = vst [vmem:[#allocation16_spill] sm:$0xff] %v3659_v40  ;;  %v3663_v41 = vld [vmem:[%s3219_s19 + $0x90] sm:$0xff]  ;;  %v3667_v42 = vld [vmem:[%s3219_s19 + $0x20] sm:$0xff]  ;;  %v3671_v43 = vld [vmem:[%s3219_s19 + $0x78] sm:$0xff] }
 0x150   : > { %805 = vmatprep.subr.mxu0 %v3579_v20  ;;  %874 = vmatprep.subr.mxu1 %v3607_v27  ;;  %4586 = vst [vmem:[#allocation17_spill] sm:$0xff] %v3663_v41  ;;  %4587 = vst [vmem:[#allocation18_spill] sm:$0xff] %v3667_v42  ;;  %v3675_v44 = vld [vmem:[%s3219_s19 + $0x8] sm:$0xff]  ;;  %v3679_v45 = vld [vmem:[%s3219_s19 + $0x70] sm:$0xff] }
 0x151   : > { %806 = vmatpush1.msra.mxu0 %v3587_v22  ;;  %875 = vmatpush1.msra.mxu1 %v3615_v29  ;;  %4588 = vst [vmem:[#allocation19_spill] sm:$0xff] %v3671_v43  ;;  %4589 = vst [vmem:[#allocation20_spill] sm:$0xff] %v3675_v44  ;;  %v3683_v46 = vld [vmem:[%s3219_s19] sm:$0xff]  ;;  %v3687_v47 = vld [vmem:[%s3219_s19 + $0x58] sm:$0xff] }
 0x152   : > { %807 = vmatprep.subr.mxu0 %v3595_v24  ;;  %876 = vmatprep.subr.mxu1 %v3623_v31  ;;  %4590 = vst [vmem:[#allocation21_spill] sm:$0xff] %v3679_v45  ;;  %4591 = vst [vmem:[#allocation22_spill] sm:$0xff] %v3683_v46  ;;  %v3692_v52 = vld [vmem:[%s3219_s19 + $0x50] sm:$0xff]  ;;  %v3697_v53 = vld [vmem:[%s3219_s19 + $0x38] sm:$0xff] }
 0x153   : > { %808 = vmatpush1.msra.mxu0 %v3603_v26  ;;  %877 = vmatpush1.msra.mxu1 %v3631_v33  ;;  %4592 = vst [vmem:[#allocation23_spill] sm:$0xff] %v3687_v47  ;;  %4593 = vst [vmem:[#allocation24_spill] sm:$0xff] %v3692_v52  ;;  %v3702_v54 = vld [vmem:[%s3219_s19 + $0x30] sm:$0xff]  ;;  %v3707_v55 = vld [vmem:[%s3219_s19 + $0x18] sm:$0xff] }
 0x154   : > { %809 = vmatprep.subr.mxu0 %v3611_v28  ;;  %878 = vmatprep.subr.mxu1 %v3639_v35  ;;  %4594 = vst [vmem:[#allocation25_spill] sm:$0xff] %v3697_v53  ;;  %4595 = vst [vmem:[#allocation26_spill] sm:$0xff] %v3702_v54 }
 0x155   : > { %810 = vmatpush1.msra.mxu0 %v3619_v30  ;;  %879 = vmatpush1.msra.mxu1 %v3647_v37  ;;  %4596 = vst [vmem:[#allocation27_spill] sm:$0xff] %v3707_v55 }
 0x156   : > { %811 = vmatprep.subr.mxu0 %v3627_v32  ;;  %880 = vmatprep.subr.mxu1 %v3655_v39 }
 0x157   : > { %812 = vmatpush1.msra.mxu0 %v3635_v34  ;;  %881 = vmatpush1.msra.mxu1 %v3663_v41 }
 0x158   : > { %813 = vmatprep.subr.mxu0 %v3643_v36  ;;  %882 = vmatprep.subr.mxu1 %v3671_v43 }
 0x159   : > { %814 = vmatpush1.msra.mxu0 %v3651_v38  ;;  %883 = vmatpush1.msra.mxu1 %v3679_v45 }
 0x15a   : > { %815 = vmatprep.subr.mxu0 %v3659_v40  ;;  %884 = vmatprep.subr.mxu1 %v3687_v47 }
 0x15b   : > { %816 = vmatpush1.msra.mxu0 %v3667_v42  ;;  %885 = vmatpush1.msra.mxu1 %v3692_v52  ;;  %v3711_v42 = vld [vmem:[%s3219_s19 + $0x10] sm:$0xff] }
 0x15c   : > { %817 = vmatprep.subr.mxu0 %v3675_v44  ;;  %886 = vmatprep.subr.mxu1 %v3697_v53  ;;  %4597 = vst [vmem:[#allocation28_spill] sm:$0xff] %v3711_v42 }
 0x15d   : > { %818 = vmatpush1.msra.mxu0 %v3683_v46  ;;  %887 = vmatpush1.msra.mxu1 %v3702_v54 }
 0x15e   : > { %852 = vmatmul.mubr.f32.vlgmr.msra.gmra.mxu0 %v4504_v51  ;;  %1027 = vmatprep.subr.mxu0 %v3458_v48 }
 0x15f   : > { %1028 = vmatpush1.msra.mxu0 %v3461_v49  ;;  %888 = vmatprep.subr.mxu1 %v3707_v55 }
 0x160   : > { %1029 = vmatprep.subr.mxu0 %v3464_v56  ;;  %889 = vmatpush1.msra.mxu1 %v3711_v42 }
 0x161   : > { %1030 = vmatpush1.msra.mxu0 %v3468_v50  ;;  %923 = vmatmul.mubr.f32.vlgmr.msra.gmra.mxu1 %v4504_v51  ;;  %v4598_v51 = vld [vmem:[#allocation18_spill] sm:$0xff] }
 0x162   : > { %1098 = vmatprep.subr.mxu1 %v3489_v61  ;;  %1031 = vmatprep.subr.mxu0 %v3473_v57 }
 0x163   : > { %1099 = vmatpush1.msra.mxu1 %v3497_v63  ;;  %1032 = vmatpush1.msra.mxu0 %v3478_v58 }
 0x164   : > { %1100 = vmatprep.subr.mxu1 %v3505_v1  ;;  %1033 = vmatprep.subr.mxu0 %v3482_v59 }
 0x165   : > { %1101 = vmatpush1.msra.mxu1 %v3508_v2  ;;  %1034 = vmatpush1.msra.mxu0 %v3486_v60 }
 0x166   : > { %1102 = vmatprep.subr.mxu1 %v3516_v4  ;;  %1035 = vmatprep.subr.mxu0 %v3493_v62 }
 0x167   : > { %1103 = vmatpush1.msra.mxu1 %v3524_v6  ;;  %1036 = vmatpush1.msra.mxu0 %v3501_v0 }
 0x168   : > { %1104 = vmatprep.subr.mxu1 %v3527_v7  ;;  %1037 = vmatprep.subr.mxu0 %v3512_v3 }
 0x169   : > { %1105 = vmatpush1.msra.mxu1 %v3535_v9  ;;  %1038 = vmatpush1.msra.mxu0 %v3520_v5 }
 0x16a   : > { %1106 = vmatprep.subr.mxu1 %v3543_v11  ;;  %1039 = vmatprep.subr.mxu0 %v3531_v8 }
 0x16b   : > { %1107 = vmatpush1.msra.mxu1 %v3551_v13  ;;  %1040 = vmatpush1.msra.mxu0 %v3539_v10 }
 0x16c   : > { %1108 = vmatprep.subr.mxu1 %v3559_v15  ;;  %1041 = vmatprep.subr.mxu0 %v3547_v12 }
 0x16d   : > { %1109 = vmatpush1.msra.mxu1 %v3567_v17  ;;  %1042 = vmatpush1.msra.mxu0 %v3555_v14 }
 0x16e   : > { %1110 = vmatprep.subr.mxu1 %v3575_v19  ;;  %1043 = vmatprep.subr.mxu0 %v3563_v16 }
 0x16f   : > { %1111 = vmatpush1.msra.mxu1 %v3583_v21  ;;  %1044 = vmatpush1.msra.mxu0 %v3571_v18 }
 0x170   : > { %1112 = vmatprep.subr.mxu1 %v3591_v23  ;;  %1045 = vmatprep.subr.mxu0 %v3579_v20 }
 0x171   : > { %1113 = vmatpush1.msra.mxu1 %v3599_v25  ;;  %1046 = vmatpush1.msra.mxu0 %v3587_v22 }
 0x172   : > { %1114 = vmatprep.subr.mxu1 %v3607_v27  ;;  %1047 = vmatprep.subr.mxu0 %v3595_v24 }
 0x173   : > { %1115 = vmatpush1.msra.mxu1 %v3615_v29  ;;  %1048 = vmatpush1.msra.mxu0 %v3603_v26 }
 0x174   : > { %1116 = vmatprep.subr.mxu1 %v3623_v31  ;;  %1049 = vmatprep.subr.mxu0 %v3611_v28 }
 0x175   : > { %1117 = vmatpush1.msra.mxu1 %v3631_v33  ;;  %1050 = vmatpush1.msra.mxu0 %v3619_v30 }
 0x176   : > { %1118 = vmatprep.subr.mxu1 %v3639_v35  ;;  %1051 = vmatprep.subr.mxu0 %v3627_v32 }
 0x177   : > { %1119 = vmatpush1.msra.mxu1 %v3647_v37  ;;  %1052 = vmatpush1.msra.mxu0 %v3635_v34 }
 0x178   : > { %1120 = vmatprep.subr.mxu1 %v3655_v39  ;;  %1053 = vmatprep.subr.mxu0 %v3643_v36  ;;  %v4599_v36 = vmov 0.0  }
 0x179   : > { %1121 = vmatpush1.msra.mxu1 %v3663_v41  ;;  %1054 = vmatpush1.msra.mxu0 %v3651_v38 }
 0x17a   : > { %1122 = vmatprep.subr.mxu1 %v3671_v43  ;;  %1055 = vmatprep.subr.mxu0 %v3659_v40  ;;  %v720_v40 = vld [vmem:[#allocation2] sm:$0xff] }
 0x17b   : > { %1123 = vmatpush1.msra.mxu1 %v3679_v45  ;;  %1056 = vmatpush1.msra.mxu0 %v4598_v51  ;;  %v719_v51 = vld [vmem:[#allocation2 + $0xb0] sm:$0xff] }
 0x17c   : > { %1124 = vmatprep.subr.mxu1 %v3687_v47  ;;  %1057 = vmatprep.subr.mxu0 %v3675_v44 }
 0x17d   : > { %1125 = vmatpush1.msra.mxu1 %v3692_v52  ;;  %1058 = vmatpush1.msra.mxu0 %v3683_v46 }
 0x17e   : > { %1126 = vmatprep.subr.mxu1 %v3697_v53  ;;  %1091 = vmatprep.mubr.f32.mxu0 %v4599_v36 }
 0x17f   : > { %1127 = vmatpush1.msra.mxu1 %v3702_v54  ;;  %1162 = vmatprep.mubr.f32.mxu1 %v4599_v36  ;;  %v721_v36 = vld [vmem:[#allocation2 + $0xd8] sm:$0xff] }
 0x180   : > { %1128 = vmatprep.subr.mxu1 %v3707_v55  ;;  %1268 = vmatprep.subr.mxu0 %v3458_v48  ;;  %v722_v55 = vld [vmem:[#allocation2 + $0x18] sm:$0xff] }
 0x181   : > { %1129 = vmatpush1.msra.mxu1 %v3711_v42 }
 0x182   : > { %1339 = vmatprep.subr.mxu1 %v3489_v61 }
 0x21e   : > { %v853_v44 = vpop.f32.mrf.mxu0 }
 0x21f   : > { %v929_v53 = vadd.f32 %v853_v44, %v719_v51 }
 0x220   : > { %v855_v52 = vpop.f32.mrf.mxu0 }
 0x221   : > { %v2813_v46 = vmul.f32 -1.442695, %v929_v53  ;;  %v930_v38 = vadd.f32 %v855_v52, %v720_v40  ;;  %v924_v47 = vpop.f32.mrf.mxu1 }
 0x222   : > { %v931_v42 = vadd.f32 %v924_v47, %v721_v36  ;;  %v4616_v47 = vmov 0.0  }
 0x223   : > { %2898 = vpow2.f32 %v2813_v46  ;;  %v2814_v54 = vmul.f32 -1.442695, %v930_v38  ;;  %v926_v45 = vpop.f32.mrf.mxu1 }
 0x224   : > { %v932_v34 = vadd.f32 %v926_v45, %v722_v55  ;;  %v4615_v45 = vld [vmem:[#allocation22_spill] sm:$0xff]  ;;  %v4617_v55 = vld [vmem:[#allocation28_spill] sm:$0xff] }
 0x225   : > { %2900 = vpow2.f32 %v2814_v54 }
 0x226   : > { %v2815_v43 = vmul.f32 -1.442695, %v932_v34  ;;  %2902 = vtanh.f32 %v931_v42  ;;  %v4613_v42 = vld [vmem:[#allocation20_spill] sm:$0xff] }
 0x228   : > { %2904 = vpow2.f32 %v2815_v43  ;;  %v4614_v43 = vld [vmem:[#allocation27_spill] sm:$0xff] }
 0x230   : > { %v2899_v48 = vpop.eup %2898 }
 0x231   : > { %v936_v32 = vadd.f32 1.0, %v2899_v48 }
 0x232   : > { %v2901_v61 = vpop.eup %2900 }
 0x233   : > { %2906 = vrcp.f32 %v936_v32  ;;  %v942_v51 = vadd.f32 1.0, %v2901_v61  ;;  %v2903_v44 = vpop.eup %2902  ;;  %v4600_v61 = vld [vmem:[#allocation17_spill] sm:$0xff]  ;;  %v4612_v32 = vld [vmem:[#allocation26_spill] sm:$0xff] }
 0x235   : > { %2908 = vrcp.f32 %v942_v51  ;;  %v2905_v40 = vpop.eup %2904  ;;  %v4618_v51 = vld [vmem:[#allocation10_spill] sm:$0xff] }
 0x236   : > { %v949_v52 = vadd.f32 1.0, %v2905_v40  ;;  %v959_v40 = vld [vmem:[#allocation2 + $0x50] sm:$0xff] }
 0x238   : > { %2910 = vrcp.f32 %v949_v52 }
 0x240   : > { %v2907_v46 = vpop.eup %2906 }
 0x241   : > { %v953_v54 = vmul.f32 %v2907_v46, %v2903_v44  ;;  %v4619_v44 = vld [vmem:[#allocation11_spill] sm:$0xff] }
 0x242   : > { %v2909_v38 = vpop.eup %2908 }
 0x243   : > { %v952_v53 = vmul.f32 0.0, %v2909_v38  ;;  %v960_v38 = vld [vmem:[#allocation2 + $0x68] sm:$0xff] }
 0x245   : > { %v3785_v41 = vadd.f32 %v953_v54, %v952_v53  ;;  %v2911_v34 = vpop.eup %2910 }
 0x247   : > { %2912 = vtanh.f32 %v3785_v41 }
 0x254   : > { %v2913_v48 = vpop.eup %2912 }
 0x255   : > { %v956_v36 = vmul.f32 %v2913_v48, %v2911_v34 }
 0x257   : > { %957 = vst [vmem:[%s4499_s4] sm:$0xff] %v956_v36  ;;  %1092 = vmatmul.mubr.f32.vlgmr.msra.gmra.mxu0 %v956_v36  ;;  %1163 = vmatmul.mubr.f32.vlgmr.msra.gmra.mxu1 %v956_v36 }
 0x258   : > { %1269 = vmatpush1.msra.mxu0 %v3461_v49  ;;  %1340 = vmatpush1.msra.mxu1 %v3497_v63 }
 0x259   : > { %1270 = vmatprep.subr.mxu0 %v3464_v56  ;;  %1341 = vmatprep.subr.mxu1 %v3505_v1 }
 0x25a   : > { %1271 = vmatpush1.msra.mxu0 %v3468_v50  ;;  %1342 = vmatpush1.msra.mxu1 %v3508_v2 }
 0x25b   : > { %1272 = vmatprep.subr.mxu0 %v3473_v57  ;;  %1343 = vmatprep.subr.mxu1 %v3516_v4 }
 0x25c   : > { %1273 = vmatpush1.msra.mxu0 %v3478_v58  ;;  %1344 = vmatpush1.msra.mxu1 %v3524_v6 }
 0x25d   : > { %1274 = vmatprep.subr.mxu0 %v3482_v59  ;;  %1345 = vmatprep.subr.mxu1 %v3527_v7 }
 0x25e   : > { %1275 = vmatpush1.msra.mxu0 %v3486_v60  ;;  %1346 = vmatpush1.msra.mxu1 %v3535_v9 }
 0x25f   : > { %1276 = vmatprep.subr.mxu0 %v3493_v62  ;;  %1347 = vmatprep.subr.mxu1 %v3543_v11 }
 0x260   : > { %1277 = vmatpush1.msra.mxu0 %v3501_v0  ;;  %1348 = vmatpush1.msra.mxu1 %v3551_v13 }
 0x261   : > { %1278 = vmatprep.subr.mxu0 %v3512_v3  ;;  %1349 = vmatprep.subr.mxu1 %v3559_v15 }
 0x262   : > { %1279 = vmatpush1.msra.mxu0 %v3520_v5  ;;  %1350 = vmatpush1.msra.mxu1 %v3567_v17 }
 0x263   : > { %1280 = vmatprep.subr.mxu0 %v3531_v8  ;;  %1351 = vmatprep.subr.mxu1 %v3575_v19 }
 0x264   : > { %1281 = vmatpush1.msra.mxu0 %v3539_v10  ;;  %1352 = vmatpush1.msra.mxu1 %v3583_v21  ;;  %v4601_v10 = vld [vmem:[#allocation12_spill] sm:$0xff] }
 0x265   : > { %1282 = vmatprep.subr.mxu0 %v3547_v12  ;;  %1353 = vmatprep.subr.mxu1 %v3591_v23  ;;  %v4602_v12 = vld [vmem:[#allocation19_spill] sm:$0xff] }
 0x266   : > { %1283 = vmatpush1.msra.mxu0 %v3555_v14  ;;  %1354 = vmatpush1.msra.mxu1 %v3599_v25  ;;  %v4603_v14 = vld [vmem:[#allocation13_spill] sm:$0xff] }
 0x267   : > { %1284 = vmatprep.subr.mxu0 %v3563_v16  ;;  %1355 = vmatprep.subr.mxu1 %v3607_v27  ;;  %v4604_v16 = vld [vmem:[#allocation21_spill] sm:$0xff] }
 0x268   : > { %1285 = vmatpush1.msra.mxu0 %v3571_v18  ;;  %1356 = vmatpush1.msra.mxu1 %v3615_v29  ;;  %v4605_v18 = vld [vmem:[#allocation14_spill] sm:$0xff] }
 0x269   : > { %1286 = vmatprep.subr.mxu0 %v3579_v20  ;;  %1357 = vmatprep.subr.mxu1 %v3623_v31  ;;  %v4606_v20 = vld [vmem:[#allocation23_spill] sm:$0xff] }
 0x26a   : > { %1287 = vmatpush1.msra.mxu0 %v3587_v22  ;;  %1358 = vmatpush1.msra.mxu1 %v3631_v33  ;;  %v4607_v22 = vld [vmem:[#allocation15_spill] sm:$0xff] }
 0x26b   : > { %1288 = vmatprep.subr.mxu0 %v3595_v24  ;;  %1359 = vmatprep.subr.mxu1 %v3639_v35  ;;  %v4608_v24 = vld [vmem:[#allocation24_spill] sm:$0xff] }
 0x26c   : > { %1289 = vmatpush1.msra.mxu0 %v3603_v26  ;;  %1360 = vmatpush1.msra.mxu1 %v3647_v37  ;;  %v4609_v26 = vld [vmem:[#allocation16_spill] sm:$0xff] }
 0x26d   : > { %1290 = vmatprep.subr.mxu0 %v3611_v28  ;;  %1361 = vmatprep.subr.mxu1 %v3655_v39  ;;  %v4610_v28 = vld [vmem:[#allocation25_spill] sm:$0xff] }
 0x26e   : > { %1291 = vmatpush1.msra.mxu0 %v3619_v30  ;;  %1362 = vmatpush1.msra.mxu1 %v4600_v61  ;;  %v4611_v30 = vld [vmem:[#allocation18_spill] sm:$0xff] }
 0x26f   : > { %1292 = vmatprep.subr.mxu0 %v4601_v10  ;;  %1363 = vmatprep.subr.mxu1 %v4602_v12  ;;  %v962_v10 = vld [vmem:[#allocation2 + $0x48] sm:$0xff] }
 0x270   : > { %1293 = vmatpush1.msra.mxu0 %v4603_v14  ;;  %1364 = vmatpush1.msra.mxu1 %v4604_v16 }
 0x271   : > { %1294 = vmatprep.subr.mxu0 %v4605_v18  ;;  %1365 = vmatprep.subr.mxu1 %v4606_v20 }
 0x272   : > { %1295 = vmatpush1.msra.mxu0 %v4607_v22  ;;  %1366 = vmatpush1.msra.mxu1 %v4608_v24  ;;  %v961_v22 = vld [vmem:[#allocation2 + $0x30] sm:$0xff] }
 0x273   : > { %1296 = vmatprep.subr.mxu0 %v4609_v26  ;;  %1367 = vmatprep.subr.mxu1 %v4610_v28 }
 0x274   : > { %1297 = vmatpush1.msra.mxu0 %v4611_v30  ;;  %1368 = vmatpush1.msra.mxu1 %v4612_v32 }
 0x275   : > { %1298 = vmatprep.subr.mxu0 %v4613_v42  ;;  %1369 = vmatprep.subr.mxu1 %v4614_v43 }
 0x276   : > { %1299 = vmatpush1.msra.mxu0 %v4615_v45  ;;  %1332 = vmatprep.mubr.f32.mxu0 %v4616_v47 }
 0x277   : > { %1370 = vmatpush1.msra.mxu1 %v4617_v55  ;;  %1403 = vmatprep.mubr.f32.mxu1 %v4616_v47 }
 0x278   : > { %1509 = vmatprep.subr.mxu0 %v4618_v51  ;;  %1580 = vmatprep.subr.mxu1 %v4619_v44 }
 0x317   : > { %v1093_v46 = vpop.f32.mrf.mxu0  ;;  %v1164_v48 = vpop.f32.mrf.mxu1 }
 0x318   : > { %v1169_v52 = vadd.f32 %v1093_v46, %v959_v40  ;;  %v1171_v42 = vadd.f32 %v1164_v48, %v961_v22 }
 0x319   : > { %v1095_v53 = vpop.f32.mrf.mxu0  ;;  %v1166_v14 = vpop.f32.mrf.mxu1 }
 0x31a   : > { %v2816_v54 = vmul.f32 -1.442695, %v1169_v52  ;;  %v1170_v34 = vadd.f32 %v1095_v53, %v960_v38  ;;  %v1172_v18 = vadd.f32 %v1166_v14, %v962_v10 }
 0x31c   : > { %2914 = vpow2.f32 %v2816_v54  ;;  %v2817_v36 = vmul.f32 -1.442695, %v1170_v34  ;;  %v2818_v26 = vmul.f32 -1.442695, %v1172_v18 }
 0x31e   : > { %2916 = vpow2.f32 %v2817_v36 }
 0x31f   : > { %2918 = vpow2.f32 %v2818_v26 }
 0x329   : > { %v2915_v30 = vpop.eup %2914 }
 0x32a   : > { %v1176_v45 = vadd.f32 1.0, %v2915_v30 }
 0x32b   : > { %v2917_v51 = vpop.eup %2916 }
 0x32c   : > { %2920 = vrcp.f32 %v1176_v45  ;;  %v1182_v44 = vadd.f32 1.0, %v2917_v51  ;;  %v2919_v40 = vpop.eup %2918  ;;  %v3995_v45 = vld [vmem:[%s3219_s19 + $0x1e8] sm:$0xff]  ;;  %v3998_v51 = vld [vmem:[%s3219_s19 + $0x1f8] sm:$0xff] }
 0x32d   : > { %2922 = vtanh.f32 %v1171_v42  ;;  %v1189_v53 = vadd.f32 1.0, %v2919_v40  ;;  %4629 = vst [vmem:[#allocation16_spill] sm:$0xff] %v3995_v45  ;;  %4630 = vst [vmem:[#allocation25_spill] sm:$0xff] %v3998_v51  ;;  %v4006_v40 = vld [vmem:[%s3219_s19 + $0x1f0] sm:$0xff] }
 0x32e   : > { %2924 = vrcp.f32 %v1182_v44  ;;  %v4003_v44 = vld [vmem:[%s3219_s19 + $0x1e0] sm:$0xff] }
 0x32f   : > { %2926 = vrcp.f32 %v1189_v53  ;;  %v4022_v53 = vld [vmem:[%s3219_s19 + $0x1d0] sm:$0xff] }
 0x339   : > { %v2921_v46 = vpop.eup %2920 }
 0x33a   : > { %v2923_v38 = vpop.eup %2922 }
 0x33b   : > { %v2925_v52 = vpop.eup %2924  ;;  %v1193_v54 = vmul.f32 %v2923_v38, %v2921_v46  ;;  %v4011_v46 = vld [vmem:[%s3219_s19 + $0x1c8] sm:$0xff]  ;;  %v4014_v38 = vld [vmem:[%s3219_s19 + $0x1d8] sm:$0xff] }
 0x33c   : > { %v1192_v34 = vmul.f32 %v2925_v52, %v3785_v41  ;;  %v2927_v48 = vpop.eup %2926  ;;  %v4019_v52 = vld [vmem:[%s3219_s19 + $0x1c0] sm:$0xff] }
 0x33e   : > { %v3858_v36 = vadd.f32 %v1193_v54, %v1192_v34  ;;  %v4027_v54 = vld [vmem:[%s3219_s19 + $0x1a8] sm:$0xff]  ;;  %v4030_v34 = vld [vmem:[%s3219_s19 + $0x1b8] sm:$0xff] }
 0x340   : > { %2928 = vtanh.f32 %v3858_v36 }
 0x34d   : > { %v2929_v10 = vpop.eup %2928 }
 0x34e   : > { %v1196_v14 = vmul.f32 %v2929_v10, %v2927_v48  ;;  %v4038_v48 = vld [vmem:[%s3219_s19 + $0x1b0] sm:$0xff]  ;;  %v4043_v10 = vld [vmem:[%s3219_s19 + $0x188] sm:$0xff] }
 0x350   : > { %2819 = vst [vmem:[%s4499_s4 + $0x8] sm:$0xff] %v1196_v14  ;;  %1333 = vmatmul.mubr.f32.vlgmr.msra.gmra.mxu0 %v1196_v14  ;;  %1404 = vmatmul.mubr.f32.vlgmr.msra.gmra.mxu1 %v1196_v14  ;;  %v4046_v14 = vld [vmem:[%s3219_s19 + $0x198] sm:$0xff] }
 0x351   : > { %1510 = vmatpush1.msra.mxu0 %v3461_v49  ;;  %1581 = vmatpush1.msra.mxu1 %v3497_v63  ;;  %v3910_v49 = vld [vmem:[%s3219_s19 + $0x120] sm:$0xff] }
 0x352   : > { %1511 = vmatprep.subr.mxu0 %v3464_v56  ;;  %1582 = vmatprep.subr.mxu1 %v3505_v1  ;;  %v3914_v56 = vld [vmem:[%s3219_s19 + $0x108] sm:$0xff]  ;;  %v3940_v63 = vld [vmem:[%s3219_s19 + $0xa0] sm:$0xff] }
 0x353   : > { %1512 = vmatpush1.msra.mxu0 %v3468_v50  ;;  %1583 = vmatpush1.msra.mxu1 %v3508_v2  ;;  %v3917_v50 = vld [vmem:[%s3219_s19 + $0x100] sm:$0xff]  ;;  %v3952_v2 = vld [vmem:[%s3219_s19 + $0x68] sm:$0xff] }
 0x354   : > { %1513 = vmatprep.subr.mxu0 %v3473_v57  ;;  %1584 = vmatprep.subr.mxu1 %v3516_v4  ;;  %v3920_v57 = vld [vmem:[%s3219_s19 + $0xe8] sm:$0xff]  ;;  %v3948_v1 = vld [vmem:[%s3219_s19 + $0x80] sm:$0xff]  ;;  %4621 = vst [vmem:[#allocation12_spill] sm:$0xff] %v3952_v2 }
 0x355   : > { %1514 = vmatpush1.msra.mxu0 %v3478_v58  ;;  %1585 = vmatpush1.msra.mxu1 %v3524_v6  ;;  %v3924_v58 = vld [vmem:[%s3219_s19 + $0xe0] sm:$0xff]  ;;  %4620 = vst [vmem:[#allocation17_spill] sm:$0xff] %v3948_v1  ;;  %v3960_v4 = vld [vmem:[%s3219_s19 + $0x48] sm:$0xff] }
 0x356   : > { %1515 = vmatprep.subr.mxu0 %v3482_v59  ;;  %1586 = vmatprep.subr.mxu1 %v3527_v7  ;;  %v3928_v59 = vld [vmem:[%s3219_s19 + $0xc8] sm:$0xff]  ;;  %4623 = vst [vmem:[#allocation13_spill] sm:$0xff] %v3960_v4  ;;  %v3972_v7 = vld [vmem:[%s3219_s19 + $0x20] sm:$0xff] }
 0x357   : > { %1516 = vmatpush1.msra.mxu0 %v3486_v60  ;;  %1587 = vmatpush1.msra.mxu1 %v3535_v9  ;;  %v3932_v60 = vld [vmem:[%s3219_s19 + $0xc0] sm:$0xff]  ;;  %v3968_v6 = vld [vmem:[%s3219_s19 + $0x28] sm:$0xff]  ;;  %4626 = vst [vmem:[#allocation23_spill] sm:$0xff] %v3972_v7 }
 0x358   : > { %1517 = vmatprep.subr.mxu0 %v3493_v62  ;;  %1588 = vmatprep.subr.mxu1 %v3543_v11  ;;  %v3936_v62 = vld [vmem:[%s3219_s19 + $0xa8] sm:$0xff]  ;;  %4625 = vst [vmem:[#allocation14_spill] sm:$0xff] %v3968_v6  ;;  %v3980_v9 = vld [vmem:[%s3219_s19] sm:$0xff] }
 0x359   : > { %1518 = vmatpush1.msra.mxu0 %v3501_v0  ;;  %1589 = vmatpush1.msra.mxu1 %v3551_v13  ;;  %v3944_v0 = vld [vmem:[%s3219_s19 + $0x88] sm:$0xff]  ;;  %4628 = vst [vmem:[#allocation24_spill] sm:$0xff] %v3980_v9  ;;  %v1200_v11 = vld [vmem:[#allocation2 + $0x80] sm:$0xff] }
 0x35a   : > { %1519 = vmatprep.subr.mxu0 %v3512_v3  ;;  %1590 = vmatprep.subr.mxu1 %v3559_v15  ;;  %v3956_v3 = vld [vmem:[%s3219_s19 + $0x60] sm:$0xff]  ;;  %v1201_v15 = vld [vmem:[#allocation2 + $0x88] sm:$0xff] }
 0x35b   : > { %1520 = vmatpush1.msra.mxu0 %v3520_v5  ;;  %1591 = vmatpush1.msra.mxu1 %v3567_v17  ;;  %4622 = vst [vmem:[#allocation19_spill] sm:$0xff] %v3956_v3  ;;  %v3964_v5 = vld [vmem:[%s3219_s19 + $0x40] sm:$0xff] }
 0x35c   : > { %1521 = vmatprep.subr.mxu0 %v3531_v8  ;;  %1592 = vmatprep.subr.mxu1 %v3575_v19  ;;  %4624 = vst [vmem:[#allocation21_spill] sm:$0xff] %v3964_v5  ;;  %v3976_v8 = vld [vmem:[%s3219_s19 + $0x8] sm:$0xff] }
 0x35d   : > { %1593 = vmatpush1.msra.mxu1 %v3583_v21  ;;  %1573 = vmatprep.mubr.f32.mxu0 %v4616_v47  ;;  %4627 = vst [vmem:[#allocation15_spill] sm:$0xff] %v3976_v8 }
 0x35e   : > { %1594 = vmatprep.subr.mxu1 %v3591_v23  ;;  %1644 = vmatprep.mubr.f32.mxu1 %v4616_v47 }
 0x35f   : > { %1595 = vmatpush1.msra.mxu1 %v3599_v25  ;;  %1522 = vmatpush1.msra.mxu0 %v3910_v49 }
 0x360   : > { %1596 = vmatprep.subr.mxu1 %v3607_v27  ;;  %1523 = vmatprep.subr.mxu0 %v3914_v56 }
 0x361   : > { %1597 = vmatpush1.msra.mxu1 %v3615_v29  ;;  %1524 = vmatpush1.msra.mxu0 %v3917_v50  ;;  %v1203_v29 = vld [vmem:[#allocation2 + $0xb8] sm:$0xff] }
 0x362   : > { %1598 = vmatprep.subr.mxu1 %v3623_v31  ;;  %1525 = vmatprep.subr.mxu0 %v3920_v57 }
 0x363   : > { %1599 = vmatpush1.msra.mxu1 %v3631_v33  ;;  %1526 = vmatpush1.msra.mxu0 %v3924_v58 }
 0x364   : > { %1600 = vmatprep.subr.mxu1 %v3639_v35  ;;  %1527 = vmatprep.subr.mxu0 %v3928_v59  ;;  %v1202_v35 = vld [vmem:[#allocation2 + $0xe8] sm:$0xff] }
 0x365   : > { %1601 = vmatpush1.msra.mxu1 %v3647_v37  ;;  %1528 = vmatpush1.msra.mxu0 %v3932_v60 }
 0x366   : > { %1602 = vmatprep.subr.mxu1 %v3655_v39  ;;  %1529 = vmatprep.subr.mxu0 %v3936_v62 }
 0x367   : > { %1603 = vmatpush1.msra.mxu1 %v4600_v61  ;;  %1530 = vmatpush1.msra.mxu0 %v3940_v63 }
 0x368   : > { %1604 = vmatprep.subr.mxu1 %v4602_v12  ;;  %1531 = vmatprep.subr.mxu0 %v3944_v0 }
 0x369   : > { %1605 = vmatpush1.msra.mxu1 %v4604_v16  ;;  %1532 = vmatpush1.msra.mxu0 %v3948_v1 }
 0x36a   : > { %1606 = vmatprep.subr.mxu1 %v4606_v20  ;;  %1533 = vmatprep.subr.mxu0 %v3952_v2 }
 0x36b   : > { %1607 = vmatpush1.msra.mxu1 %v4608_v24  ;;  %1534 = vmatpush1.msra.mxu0 %v3956_v3 }
 0x36c   : > { %1608 = vmatprep.subr.mxu1 %v4610_v28  ;;  %1535 = vmatprep.subr.mxu0 %v3960_v4 }
 0x36d   : > { %1609 = vmatpush1.msra.mxu1 %v4612_v32  ;;  %1536 = vmatpush1.msra.mxu0 %v3964_v5 }
 0x36e   : > { %1610 = vmatprep.subr.mxu1 %v4614_v43  ;;  %1537 = vmatprep.subr.mxu0 %v3968_v6 }
 0x36f   : > { %1611 = vmatpush1.msra.mxu1 %v4617_v55  ;;  %1538 = vmatpush1.msra.mxu0 %v3972_v7 }
 0x370   : > { %1539 = vmatprep.subr.mxu0 %v3976_v8  ;;  %1821 = vmatprep.subr.mxu1 %v3998_v51 }
 0x371   : > { %1540 = vmatpush1.msra.mxu0 %v3980_v9 }
 0x372   : > { %1750 = vmatprep.subr.mxu0 %v3995_v45 }
 0x410   : > { %v1334_v13 = vpop.f32.mrf.mxu0  ;;  %v1405_v25 = vpop.f32.mrf.mxu1 }
 0x411   : > { %v1410_v17 = vadd.f32 %v1334_v13, %v1200_v11  ;;  %v1412_v41 = vadd.f32 %v1405_v25, %v1202_v35  ;;  %v4051_v11 = vld [vmem:[%s3219_s19 + $0x180] sm:$0xff]  ;;  %v4054_v13 = vld [vmem:[%s3219_s19 + $0x190] sm:$0xff]  ;;  %v4078_v25 = vld [vmem:[%s3219_s19 + $0x158] sm:$0xff] }
 0x412   : > { %v1336_v19 = vpop.f32.mrf.mxu0  ;;  %v1407_v31 = vpop.f32.mrf.mxu1  ;;  %v4099_v35 = vld [vmem:[%s3219_s19 + $0x130] sm:$0xff] }
 0x413   : > { %v2820_v21 = vmul.f32 -1.442695, %v1410_v17  ;;  %v1411_v23 = vadd.f32 %v1336_v19, %v1201_v15  ;;  %v1413_v33 = vadd.f32 %v1407_v31, %v1203_v29  ;;  %v4059_v15 = vld [vmem:[%s3219_s19 + $0x168] sm:$0xff]  ;;  %v4062_v17 = vld [vmem:[%s3219_s19 + $0x178] sm:$0xff]  ;;  %v4067_v19 = vld [vmem:[%s3219_s19 + $0x160] sm:$0xff] }
 0x414   : > { %v4086_v29 = vld [vmem:[%s3219_s19 + $0x150] sm:$0xff]  ;;  %v4091_v31 = vld [vmem:[%s3219_s19 + $0x128] sm:$0xff] }
 0x415   : > { %2930 = vpow2.f32 %v2820_v21  ;;  %v2821_v27 = vmul.f32 -1.442695, %v1411_v23  ;;  %v2822_v37 = vmul.f32 -1.442695, %v1413_v33  ;;  %v4070_v21 = vld [vmem:[%s3219_s19 + $0x170] sm:$0xff]  ;;  %v4075_v23 = vld [vmem:[%s3219_s19 + $0x148] sm:$0xff] }
 0x416   : > { %v4094_v33 = vld [vmem:[%s3219_s19 + $0x138] sm:$0xff] }
 0x417   : > { %2932 = vpow2.f32 %v2821_v27  ;;  %v4083_v27 = vld [vmem:[%s3219_s19 + $0x140] sm:$0xff] }
 0x418   : > { %2934 = vpow2.f32 %v2822_v37  ;;  %v4104_v37 = vld [vmem:[%s3219_s19 + $0x118] sm:$0xff] }
 0x422   : > { %v2931_v39 = vpop.eup %2930 }
 0x423   : > { %v1417_v61 = vadd.f32 1.0, %v2931_v39  ;;  %v4107_v39 = vld [vmem:[%s3219_s19 + $0x110] sm:$0xff] }
 0x424   : > { %v2933_v12 = vpop.eup %2932 }
 0x425   : > { %2936 = vrcp.f32 %v1417_v61  ;;  %v1423_v16 = vadd.f32 1.0, %v2933_v12  ;;  %v2935_v20 = vpop.eup %2934  ;;  %v4115_v61 = vld [vmem:[%s3219_s19 + $0xf0] sm:$0xff]  ;;  %v4120_v12 = vld [vmem:[%s3219_s19 + $0xd8] sm:$0xff] }
 0x426   : > { %2938 = vtanh.f32 %v1412_v41  ;;  %v1430_v43 = vadd.f32 1.0, %v2935_v20  ;;  %v4110_v41 = vld [vmem:[%s3219_s19 + $0xf8] sm:$0xff] }
 0x427   : > { %2940 = vrcp.f32 %v1423_v16  ;;  %v4125_v16 = vld [vmem:[%s3219_s19 + $0xd0] sm:$0xff]  ;;  %v4130_v20 = vld [vmem:[%s3219_s19 + $0xb8] sm:$0xff] }
 0x428   : > { %2942 = vrcp.f32 %v1430_v43  ;;  %v4150_v43 = vld [vmem:[%s3219_s19 + $0x78] sm:$0xff] }
 0x429   : > { %4632 = vst [vmem:[#allocation26_spill] sm:$0xff] %v4150_v43 }
 0x432   : > { %v2937_v24 = vpop.eup %2936 }
 0x433   : > { %v2939_v28 = vpop.eup %2938 }
 0x434   : > { %v2941_v32 = vpop.eup %2940  ;;  %v1434_v55 = vmul.f32 %v2939_v28, %v2937_v24  ;;  %v4135_v24 = vld [vmem:[%s3219_s19 + $0xb0] sm:$0xff]  ;;  %v4140_v28 = vld [vmem:[%s3219_s19 + $0x98] sm:$0xff] }
 0x435   : > { %v1433_v18 = vmul.f32 %v2941_v32, %v3858_v36  ;;  %v2943_v26 = vpop.eup %2942  ;;  %v4035_v36 = vld [vmem:[%s3219_s19 + $0x1a0] sm:$0xff]  ;;  %v4145_v32 = vld [vmem:[%s3219_s19 + $0x90] sm:$0xff] }
 0x436   : > { %4631 = vst [vmem:[#allocation18_spill] sm:$0xff] %v4145_v32 }
 0x437   : > { %v3986_v22 = vadd.f32 %v1434_v55, %v1433_v18  ;;  %v4155_v55 = vld [vmem:[%s3219_s19 + $0x70] sm:$0xff]  ;;  %v4160_v18 = vld [vmem:[%s3219_s19 + $0x58] sm:$0xff] }
 0x438   : > { %4633 = vst [vmem:[#allocation20_spill] sm:$0xff] %v4155_v55  ;;  %4634 = vst [vmem:[#allocation27_spill] sm:$0xff] %v4160_v18 }
 0x439   : > { %2944 = vtanh.f32 %v3986_v22 }
 0x446   : > { %v2945_v30 = vpop.eup %2944 }
 0x447   : > { %v1437_v42 = vmul.f32 %v2945_v30, %v2943_v26  ;;  %v4165_v26 = vld [vmem:[%s3219_s19 + $0x50] sm:$0xff]  ;;  %v4170_v30 = vld [vmem:[%s3219_s19 + $0x38] sm:$0xff] }
 0x448   : > { %4635 = vst [vmem:[#allocation22_spill] sm:$0xff] %v4165_v26  ;;  %4636 = vst [vmem:[#allocation28_spill] sm:$0xff] %v4170_v30 }
 0x449   : > { %2823 = vst [vmem:[%s4499_s4 + $0x10] sm:$0xff] %v1437_v42  ;;  %1574 = vmatmul.mubr.f32.vlgmr.msra.gmra.mxu0 %v1437_v42  ;;  %1645 = vmatmul.mubr.f32.vlgmr.msra.gmra.mxu1 %v1437_v42  ;;  %v4175_v42 = vld [vmem:[%s3219_s19 + $0x30] sm:$0xff] }
 0x44a   : > { %1814 = vmatprep.mubr.f32.mxu0 %v4616_v47  ;;  %1885 = vmatprep.mubr.f32.mxu1 %v4616_v47  ;;  %4637 = vst [vmem:[#allocation10_spill] sm:$0xff] %v4175_v42  ;;  %v4180_v47 = vld [vmem:[%s3219_s19 + $0x18] sm:$0xff] }
 0x44b   : > { %1751 = vmatpush1.msra.mxu0 %v4003_v44  ;;  %1822 = vmatpush1.msra.mxu1 %v4006_v40  ;;  %4638 = vst [vmem:[#allocation11_spill] sm:$0xff] %v4180_v47 }
 0x44c   : > { %1752 = vmatprep.subr.mxu0 %v4011_v46  ;;  %1823 = vmatprep.subr.mxu1 %v4014_v38 }
 0x44d   : > { %1753 = vmatpush1.msra.mxu0 %v4019_v52  ;;  %1824 = vmatpush1.msra.mxu1 %v4022_v53 }
 0x44e   : > { %1754 = vmatprep.subr.mxu0 %v4027_v54  ;;  %1825 = vmatprep.subr.mxu1 %v4030_v34 }
 0x44f   : > { %1755 = vmatpush1.msra.mxu0 %v4035_v36  ;;  %1826 = vmatpush1.msra.mxu1 %v4038_v48 }
 0x450   : > { %1756 = vmatprep.subr.mxu0 %v4043_v10  ;;  %1827 = vmatprep.subr.mxu1 %v4046_v14 }
 0x451   : > { %1757 = vmatpush1.msra.mxu0 %v4051_v11  ;;  %1828 = vmatpush1.msra.mxu1 %v4054_v13 }
 0x452   : > { %1758 = vmatprep.subr.mxu0 %v4059_v15  ;;  %1829 = vmatprep.subr.mxu1 %v4062_v17 }
 0x453   : > { %1759 = vmatpush1.msra.mxu0 %v4067_v19  ;;  %1830 = vmatpush1.msra.mxu1 %v4070_v21 }
 0x454   : > { %1760 = vmatprep.subr.mxu0 %v4075_v23  ;;  %1831 = vmatprep.subr.mxu1 %v4078_v25 }
 0x455   : > { %1761 = vmatpush1.msra.mxu0 %v4083_v27  ;;  %1832 = vmatpush1.msra.mxu1 %v4086_v29 }
 0x456   : > { %1762 = vmatprep.subr.mxu0 %v4091_v31  ;;  %1833 = vmatprep.subr.mxu1 %v4094_v33 }
 0x457   : > { %1763 = vmatpush1.msra.mxu0 %v3910_v49  ;;  %1834 = vmatpush1.msra.mxu1 %v4099_v35 }
 0x458   : > { %1764 = vmatprep.subr.mxu0 %v3914_v56  ;;  %1835 = vmatprep.subr.mxu1 %v4104_v37 }
 0x459   : > { %1765 = vmatpush1.msra.mxu0 %v3917_v50  ;;  %1836 = vmatpush1.msra.mxu1 %v4107_v39 }
 0x45a   : > { %1766 = vmatprep.subr.mxu0 %v3920_v57  ;;  %1837 = vmatprep.subr.mxu1 %v4110_v41 }
 0x45b   : > { %1767 = vmatpush1.msra.mxu0 %v3924_v58  ;;  %1838 = vmatpush1.msra.mxu1 %v4115_v61 }
 0x45c   : > { %1768 = vmatprep.subr.mxu0 %v3928_v59  ;;  %1839 = vmatprep.subr.mxu1 %v4120_v12 }
 0x45d   : > { %1769 = vmatpush1.msra.mxu0 %v3932_v60  ;;  %1840 = vmatpush1.msra.mxu1 %v4125_v16 }
 0x45e   : > { %1770 = vmatprep.subr.mxu0 %v3936_v62  ;;  %1841 = vmatprep.subr.mxu1 %v4130_v20 }
 0x45f   : > { %1771 = vmatpush1.msra.mxu0 %v3940_v63  ;;  %1842 = vmatpush1.msra.mxu1 %v4135_v24 }
 0x460   : > { %1772 = vmatprep.subr.mxu0 %v3944_v0  ;;  %1843 = vmatprep.subr.mxu1 %v4140_v28 }
 0x461   : > { %1773 = vmatpush1.msra.mxu0 %v3948_v1  ;;  %1844 = vmatpush1.msra.mxu1 %v4145_v32 }
 0x462   : > { %1774 = vmatprep.subr.mxu0 %v3952_v2  ;;  %1845 = vmatprep.subr.mxu1 %v4150_v43  ;;  %v1443_v43 = vld [vmem:[#allocation2 + $0x8] sm:$0xff] }
 0x463   : > { %1775 = vmatpush1.msra.mxu0 %v3956_v3  ;;  %1846 = vmatpush1.msra.mxu1 %v4155_v55  ;;  %v4185_v3 = vld [vmem:[%s3219_s19 + $0x10] sm:$0xff] }
 0x464   : > { %1776 = vmatprep.subr.mxu0 %v3960_v4  ;;  %1847 = vmatprep.subr.mxu1 %v4160_v18  ;;  %4639 = vst [vmem:[#allocation29_spill] sm:$0xff] %v4185_v3 }
 0x465   : > { %1777 = vmatpush1.msra.mxu0 %v3964_v5  ;;  %1848 = vmatpush1.msra.mxu1 %v4165_v26  ;;  %v1442_v26 = vld [vmem:[#allocation2 + $0xf0] sm:$0xff] }
 0x466   : > { %1778 = vmatprep.subr.mxu0 %v3968_v6  ;;  %1849 = vmatprep.subr.mxu1 %v4170_v30  ;;  %v1441_v6 = vld [vmem:[#allocation2 + $0x60] sm:$0xff] }
 0x467   : > { %1779 = vmatpush1.msra.mxu0 %v3972_v7  ;;  %1850 = vmatpush1.msra.mxu1 %v4175_v42 }
 0x468   : > { %1780 = vmatprep.subr.mxu0 %v3976_v8  ;;  %1851 = vmatprep.subr.mxu1 %v4180_v47  ;;  %v1444_v47 = vld [vmem:[#allocation2 + $0x78] sm:$0xff] }
 0x469   : > { %1781 = vmatpush1.msra.mxu0 %v3980_v9  ;;  %1852 = vmatpush1.msra.mxu1 %v4185_v3 }
 0x46a   : > { %1991 = vmatprep.subr.mxu0 %v3995_v45  ;;  %2062 = vmatprep.subr.mxu1 %v3998_v51 }
 0x509   : > { %v1575_v30 = vpop.f32.mrf.mxu0  ;;  %v1646_v42 = vpop.f32.mrf.mxu1 }
 0x50a   : > { %v1651_v5 = vadd.f32 %v1575_v30, %v1441_v6  ;;  %v1653_v45 = vadd.f32 %v1646_v42, %v1443_v43  ;;  %v4645_v43 = vld [vmem:[#allocation20_spill] sm:$0xff]  ;;  %v4647_v30 = vld [vmem:[#allocation27_spill] sm:$0xff]  ;;  %v4648_v42 = vld [vmem:[#allocation21_spill] sm:$0xff] }
 0x50b   : > { %v1577_v18 = vpop.f32.mrf.mxu0  ;;  %v1648_v55 = vpop.f32.mrf.mxu1 }
 0x50c   : > { %v2824_v7 = vmul.f32 -1.442695, %v1651_v5  ;;  %v1652_v4 = vadd.f32 %v1577_v18, %v1442_v26  ;;  %v1654_v9 = vadd.f32 %v1648_v55, %v1444_v47  ;;  %v4646_v55 = vld [vmem:[#allocation13_spill] sm:$0xff] }
 0x50e   : > { %2946 = vpow2.f32 %v2824_v7  ;;  %v2825_v8 = vmul.f32 -1.442695, %v1652_v4  ;;  %v2826_v3 = vmul.f32 -1.442695, %v1654_v9 }
 0x510   : > { %2948 = vpow2.f32 %v2825_v8 }
 0x511   : > { %2950 = vpow2.f32 %v2826_v3 }
 0x51b   : > { %v2947_v2 = vpop.eup %2946 }
 0x51c   : > { %v1658_v32 = vadd.f32 1.0, %v2947_v2 }
 0x51d   : > { %v2949_v51 = vpop.eup %2948 }
 0x51e   : > { %2952 = vrcp.f32 %v1658_v32  ;;  %v1664_v1 = vadd.f32 1.0, %v2949_v51  ;;  %v2951_v5 = vpop.eup %2950  ;;  %v4643_v51 = vld [vmem:[#allocation26_spill] sm:$0xff]  ;;  %v4644_v32 = vld [vmem:[#allocation19_spill] sm:$0xff] }
 0x51f   : > { %2954 = vtanh.f32 %v1653_v45  ;;  %v1671_v4 = vadd.f32 1.0, %v2951_v5  ;;  %v4642_v45 = vld [vmem:[#allocation12_spill] sm:$0xff]  ;;  %v4649_v5 = vld [vmem:[#allocation22_spill] sm:$0xff] }
 0x520   : > { %2956 = vrcp.f32 %v1664_v1  ;;  %v4640_v1 = vld [vmem:[#allocation17_spill] sm:$0xff] }
 0x521   : > { %2958 = vrcp.f32 %v1671_v4  ;;  %v4653_v4 = vld [vmem:[#allocation10_spill] sm:$0xff] }
 0x52b   : > { %v2953_v6 = vpop.eup %2952 }
 0x52c   : > { %v2955_v7 = vpop.eup %2954 }
 0x52d   : > { %v2957_v18 = vpop.eup %2956  ;;  %v1675_v8 = vmul.f32 %v2955_v7, %v2953_v6  ;;  %v4650_v6 = vld [vmem:[#allocation14_spill] sm:$0xff]  ;;  %v4651_v7 = vld [vmem:[#allocation28_spill] sm:$0xff] }
 0x52e   : > { %v1674_v26 = vmul.f32 %v2957_v18, %v3986_v22  ;;  %v2959_v2 = vpop.eup %2958  ;;  %v4641_v22 = vld [vmem:[#allocation18_spill] sm:$0xff]  ;;  %v4652_v18 = vld [vmem:[#allocation23_spill] sm:$0xff] }
 0x530   : > { %v4196_v47 = vadd.f32 %v1675_v8, %v1674_v26  ;;  %v4654_v8 = vld [vmem:[#allocation15_spill] sm:$0xff] }
 0x531   : > { %v4655_v26 = vld [vmem:[#allocation11_spill] sm:$0xff] }
 0x532   : > { %2960 = vtanh.f32 %v4196_v47 }
 0x53f   : > { %v2961_v9 = vpop.eup %2960 }
 0x540   : > { %v1678_v3 = vmul.f32 %v2961_v9, %v2959_v2  ;;  %v4656_v2 = vld [vmem:[#allocation24_spill] sm:$0xff]  ;;  %v4657_v9 = vmov 0.0  }
 0x542   : > { %2827 = vst [vmem:[%s4499_s4 + $0x18] sm:$0xff] %v1678_v3  ;;  %1815 = vmatmul.mubr.f32.vlgmr.msra.gmra.mxu0 %v1678_v3  ;;  %1886 = vmatmul.mubr.f32.vlgmr.msra.gmra.mxu1 %v1678_v3  ;;  %v4658_v3 = vld [vmem:[#allocation29_spill] sm:$0xff] }
 0x543   : > { %1992 = vmatpush1.msra.mxu0 %v4003_v44  ;;  %2063 = vmatpush1.msra.mxu1 %v4006_v40 }
 0x544   : > { %1993 = vmatprep.subr.mxu0 %v4011_v46  ;;  %2064 = vmatprep.subr.mxu1 %v4014_v38 }
 0x545   : > { %1994 = vmatpush1.msra.mxu0 %v4019_v52  ;;  %2065 = vmatpush1.msra.mxu1 %v4022_v53 }
 0x546   : > { %1995 = vmatprep.subr.mxu0 %v4027_v54  ;;  %2066 = vmatprep.subr.mxu1 %v4030_v34 }
 0x547   : > { %1996 = vmatpush1.msra.mxu0 %v4035_v36  ;;  %2067 = vmatpush1.msra.mxu1 %v4038_v48 }
 0x548   : > { %1997 = vmatprep.subr.mxu0 %v4043_v10  ;;  %2068 = vmatprep.subr.mxu1 %v4046_v14 }
 0x549   : > { %1998 = vmatpush1.msra.mxu0 %v4051_v11  ;;  %2069 = vmatpush1.msra.mxu1 %v4054_v13 }
 0x54a   : > { %1999 = vmatprep.subr.mxu0 %v4059_v15  ;;  %2070 = vmatprep.subr.mxu1 %v4062_v17 }
 0x54b   : > { %2000 = vmatpush1.msra.mxu0 %v4067_v19  ;;  %2071 = vmatpush1.msra.mxu1 %v4070_v21 }
 0x54c   : > { %2001 = vmatprep.subr.mxu0 %v4075_v23  ;;  %2072 = vmatprep.subr.mxu1 %v4078_v25 }
 0x54d   : > { %2002 = vmatpush1.msra.mxu0 %v4083_v27  ;;  %2073 = vmatpush1.msra.mxu1 %v4086_v29 }
 0x54e   : > { %2003 = vmatprep.subr.mxu0 %v4091_v31  ;;  %2074 = vmatprep.subr.mxu1 %v4094_v33 }
 0x54f   : > { %2004 = vmatpush1.msra.mxu0 %v3910_v49  ;;  %2075 = vmatpush1.msra.mxu1 %v4099_v35 }
 0x550   : > { %2005 = vmatprep.subr.mxu0 %v3914_v56  ;;  %2076 = vmatprep.subr.mxu1 %v4104_v37 }
 0x551   : > { %2006 = vmatpush1.msra.mxu0 %v3917_v50  ;;  %2077 = vmatpush1.msra.mxu1 %v4107_v39 }
 0x552   : > { %2007 = vmatprep.subr.mxu0 %v3920_v57  ;;  %2078 = vmatprep.subr.mxu1 %v4110_v41 }
 0x553   : > { %2008 = vmatpush1.msra.mxu0 %v3924_v58  ;;  %2079 = vmatpush1.msra.mxu1 %v4115_v61 }
 0x554   : > { %2009 = vmatprep.subr.mxu0 %v3928_v59  ;;  %2080 = vmatprep.subr.mxu1 %v4120_v12 }
 0x555   : > { %2010 = vmatpush1.msra.mxu0 %v3932_v60  ;;  %2081 = vmatpush1.msra.mxu1 %v4125_v16 }
 0x556   : > { %2011 = vmatprep.subr.mxu0 %v3936_v62  ;;  %2082 = vmatprep.subr.mxu1 %v4130_v20 }
 0x557   : > { %2012 = vmatpush1.msra.mxu0 %v3940_v63  ;;  %2083 = vmatpush1.msra.mxu1 %v4135_v24 }
 0x558   : > { %2013 = vmatprep.subr.mxu0 %v3944_v0  ;;  %2084 = vmatprep.subr.mxu1 %v4140_v28 }
 0x559   : > { %2014 = vmatpush1.msra.mxu0 %v4640_v1  ;;  %2085 = vmatpush1.msra.mxu1 %v4641_v22 }
 0x55a   : > { %2015 = vmatprep.subr.mxu0 %v4642_v45  ;;  %2086 = vmatprep.subr.mxu1 %v4643_v51  ;;  %v1684_v51 = vld [vmem:[#allocation2 + $0x40] sm:$0xff] }
 0x55b   : > { %2016 = vmatpush1.msra.mxu0 %v4644_v32  ;;  %2087 = vmatpush1.msra.mxu1 %v4645_v43  ;;  %v1685_v43 = vld [vmem:[#allocation2 + $0xc8] sm:$0xff] }
 0x55c   : > { %2017 = vmatprep.subr.mxu0 %v4646_v55  ;;  %2088 = vmatprep.subr.mxu1 %v4647_v30 }
 0x55d   : > { %2018 = vmatpush1.msra.mxu0 %v4648_v42  ;;  %2089 = vmatpush1.msra.mxu1 %v4649_v5  ;;  %v4659_v5 = vld [vmem:[#allocation16_spill] sm:$0xff]  ;;  %v1683_v42 = vld [vmem:[#allocation2 + $0x58] sm:$0xff] }
 0x55e   : > { %2019 = vmatprep.subr.mxu0 %v4650_v6  ;;  %2090 = vmatprep.subr.mxu1 %v4651_v7  ;;  %v4660_v6 = vld [vmem:[#allocation25_spill] sm:$0xff] }
 0x55f   : > { %2020 = vmatpush1.msra.mxu0 %v4652_v18  ;;  %2091 = vmatpush1.msra.mxu1 %v4653_v4  ;;  %v1682_v7 = vld [vmem:[#allocation2 + $0x38] sm:$0xff] }
 0x560   : > { %2021 = vmatprep.subr.mxu0 %v4654_v8  ;;  %2092 = vmatprep.subr.mxu1 %v4655_v26 }
 0x561   : > { %2022 = vmatpush1.msra.mxu0 %v4656_v2  ;;  %2055 = vmatprep.mubr.f32.mxu0 %v4657_v9 }
 0x562   : > { %2093 = vmatpush1.msra.mxu1 %v4658_v3  ;;  %2126 = vmatprep.mubr.f32.mxu1 %v4657_v9 }
 0x563   : > { %2232 = vmatprep.subr.mxu0 %v4659_v5  ;;  %2303 = vmatprep.subr.mxu1 %v4660_v6 }
 0x602   : > { %v1816_v18 = vpop.f32.mrf.mxu0  ;;  %v1887_v26 = vpop.f32.mrf.mxu1 }
 0x603   : > { %v1892_v4 = vadd.f32 %v1816_v18, %v1682_v7  ;;  %v1894_v5 = vadd.f32 %v1887_v26, %v1684_v51  ;;  %v4676_v26 = vld [vmem:[#allocation11_spill] sm:$0xff] }
 0x604   : > { %v1818_v30 = vpop.f32.mrf.mxu0  ;;  %v1889_v32 = vpop.f32.mrf.mxu1 }
 0x605   : > { %v2828_v8 = vmul.f32 -1.442695, %v1892_v4  ;;  %v1893_v55 = vadd.f32 %v1818_v30, %v1683_v42  ;;  %v1895_v3 = vadd.f32 %v1889_v32, %v1685_v43 }
 0x607   : > { %2962 = vpow2.f32 %v2828_v8  ;;  %v2829_v2 = vmul.f32 -1.442695, %v1893_v55  ;;  %v2830_v9 = vmul.f32 -1.442695, %v1895_v3  ;;  %v4679_v3 = vld [vmem:[#allocation29_spill] sm:$0xff] }
 0x609   : > { %2964 = vpow2.f32 %v2829_v2  ;;  %v4677_v2 = vld [vmem:[#allocation24_spill] sm:$0xff] }
 0x60a   : > { %2966 = vpow2.f32 %v2830_v9  ;;  %v4678_v9 = vmov 0.0  }
 0x614   : > { %v2963_v45 = vpop.eup %2962 }
 0x615   : > { %v1899_v22 = vadd.f32 1.0, %v2963_v45 }
 0x616   : > { %v2965_v6 = vpop.eup %2964 }
 0x617   : > { %2968 = vrcp.f32 %v1899_v22  ;;  %v1905_v1 = vadd.f32 1.0, %v2965_v6  ;;  %v2967_v7 = vpop.eup %2966  ;;  %v4673_v22 = vld [vmem:[#allocation23_spill] sm:$0xff] }
 0x618   : > { %2970 = vtanh.f32 %v1894_v5  ;;  %v1912_v55 = vadd.f32 1.0, %v2967_v7  ;;  %v4674_v5 = vld [vmem:[#allocation10_spill] sm:$0xff]  ;;  %v4675_v6 = vld [vmem:[#allocation15_spill] sm:$0xff]  ;;  %v4680_v7 = vld [vmem:[#allocation16_spill] sm:$0xff] }
 0x619   : > { %2972 = vrcp.f32 %v1905_v1  ;;  %v4672_v1 = vld [vmem:[#allocation28_spill] sm:$0xff] }
 0x61a   : > { %2974 = vrcp.f32 %v1912_v55  ;;  %v1924_v55 = vld [vmem:[#allocation2 + $0x90] sm:$0xff] }
 0x624   : > { %v2969_v30 = vpop.eup %2968 }
 0x625   : > { %v2971_v42 = vpop.eup %2970 }
 0x626   : > { %v2973_v18 = vpop.eup %2972  ;;  %v1916_v4 = vmul.f32 %v2971_v42, %v2969_v30  ;;  %v4681_v30 = vld [vmem:[#allocation25_spill] sm:$0xff]  ;;  %v1923_v42 = vld [vmem:[#allocation2 + $0xe0] sm:$0xff] }
 0x627   : > { %v1915_v8 = vmul.f32 %v2973_v18, %v4196_v47  ;;  %v2975_v45 = vpop.eup %2974  ;;  %v4671_v47 = vld [vmem:[#allocation14_spill] sm:$0xff] }
 0x629   : > { %v4269_v32 = vadd.f32 %v1916_v4, %v1915_v8 }
 0x62b   : > { %2976 = vtanh.f32 %v4269_v32 }
 0x638   : > { %v2977_v51 = vpop.eup %2976 }
 0x639   : > { %v1919_v43 = vmul.f32 %v2977_v51, %v2975_v45 }
 0x63b   : > { %2831 = vst [vmem:[%s4499_s4 + $0x20] sm:$0xff] %v1919_v43  ;;  %2056 = vmatmul.mubr.f32.vlgmr.msra.gmra.mxu0 %v1919_v43  ;;  %2127 = vmatmul.mubr.f32.vlgmr.msra.gmra.mxu1 %v1919_v43 }
 0x63c   : > { %2233 = vmatpush1.msra.mxu0 %v4003_v44  ;;  %2304 = vmatpush1.msra.mxu1 %v4006_v40 }
 0x63d   : > { %2234 = vmatprep.subr.mxu0 %v4011_v46  ;;  %2305 = vmatprep.subr.mxu1 %v4014_v38 }
 0x63e   : > { %2235 = vmatpush1.msra.mxu0 %v4019_v52  ;;  %2306 = vmatpush1.msra.mxu1 %v4022_v53 }
 0x63f   : > { %2236 = vmatprep.subr.mxu0 %v4027_v54  ;;  %2307 = vmatprep.subr.mxu1 %v4030_v34 }
 0x640   : > { %2237 = vmatpush1.msra.mxu0 %v4035_v36  ;;  %2308 = vmatpush1.msra.mxu1 %v4038_v48 }
 0x641   : > { %2238 = vmatprep.subr.mxu0 %v4043_v10  ;;  %2309 = vmatprep.subr.mxu1 %v4046_v14 }
 0x642   : > { %2239 = vmatpush1.msra.mxu0 %v4051_v11  ;;  %2310 = vmatpush1.msra.mxu1 %v4054_v13 }
 0x643   : > { %2240 = vmatprep.subr.mxu0 %v4059_v15  ;;  %2311 = vmatprep.subr.mxu1 %v4062_v17 }
 0x644   : > { %2241 = vmatpush1.msra.mxu0 %v4067_v19  ;;  %2312 = vmatpush1.msra.mxu1 %v4070_v21 }
 0x645   : > { %2242 = vmatprep.subr.mxu0 %v4075_v23  ;;  %2313 = vmatprep.subr.mxu1 %v4078_v25 }
 0x646   : > { %2243 = vmatpush1.msra.mxu0 %v4083_v27  ;;  %2314 = vmatpush1.msra.mxu1 %v4086_v29 }
 0x647   : > { %2244 = vmatprep.subr.mxu0 %v4091_v31  ;;  %2315 = vmatprep.subr.mxu1 %v4094_v33 }
 0x648   : > { %2245 = vmatpush1.msra.mxu0 %v3910_v49  ;;  %2316 = vmatpush1.msra.mxu1 %v4099_v35  ;;  %v4661_v49 = vld [vmem:[#allocation17_spill] sm:$0xff] }
 0x649   : > { %2246 = vmatprep.subr.mxu0 %v3914_v56  ;;  %2317 = vmatprep.subr.mxu1 %v4104_v37  ;;  %v4662_v56 = vld [vmem:[#allocation18_spill] sm:$0xff] }
 0x64a   : > { %2247 = vmatpush1.msra.mxu0 %v3917_v50  ;;  %2318 = vmatpush1.msra.mxu1 %v4107_v39  ;;  %v4663_v50 = vld [vmem:[#allocation12_spill] sm:$0xff] }
 0x64b   : > { %2248 = vmatprep.subr.mxu0 %v3920_v57  ;;  %2319 = vmatprep.subr.mxu1 %v4110_v41  ;;  %v4664_v57 = vld [vmem:[#allocation26_spill] sm:$0xff] }
 0x64c   : > { %2249 = vmatpush1.msra.mxu0 %v3924_v58  ;;  %2320 = vmatpush1.msra.mxu1 %v4115_v61  ;;  %v4665_v58 = vld [vmem:[#allocation19_spill] sm:$0xff] }
 0x64d   : > { %2250 = vmatprep.subr.mxu0 %v3928_v59  ;;  %2321 = vmatprep.subr.mxu1 %v4120_v12  ;;  %v4666_v59 = vld [vmem:[#allocation20_spill] sm:$0xff] }
 0x64e   : > { %2251 = vmatpush1.msra.mxu0 %v3932_v60  ;;  %2322 = vmatpush1.msra.mxu1 %v4125_v16  ;;  %v4667_v60 = vld [vmem:[#allocation13_spill] sm:$0xff] }
 0x64f   : > { %2252 = vmatprep.subr.mxu0 %v3936_v62  ;;  %2323 = vmatprep.subr.mxu1 %v4130_v20  ;;  %v4668_v62 = vld [vmem:[#allocation27_spill] sm:$0xff] }
 0x650   : > { %2253 = vmatpush1.msra.mxu0 %v3940_v63  ;;  %2324 = vmatpush1.msra.mxu1 %v4135_v24  ;;  %v4669_v63 = vld [vmem:[#allocation21_spill] sm:$0xff] }
 0x651   : > { %2254 = vmatprep.subr.mxu0 %v3944_v0  ;;  %2325 = vmatprep.subr.mxu1 %v4140_v28  ;;  %v4670_v0 = vld [vmem:[#allocation22_spill] sm:$0xff] }
 0x652   : > { %2255 = vmatpush1.msra.mxu0 %v4661_v49  ;;  %2326 = vmatpush1.msra.mxu1 %v4662_v56 }
 0x653   : > { %2256 = vmatprep.subr.mxu0 %v4663_v50  ;;  %2327 = vmatprep.subr.mxu1 %v4664_v57  ;;  %v1926_v50 = vld [vmem:[#allocation2 + $0xc0] sm:$0xff] }
 0x654   : > { %2257 = vmatpush1.msra.mxu0 %v4665_v58  ;;  %2328 = vmatpush1.msra.mxu1 %v4666_v59 }
 0x655   : > { %2258 = vmatprep.subr.mxu0 %v4667_v60  ;;  %2329 = vmatprep.subr.mxu1 %v4668_v62 }
 0x656   : > { %2259 = vmatpush1.msra.mxu0 %v4669_v63  ;;  %2330 = vmatpush1.msra.mxu1 %v4670_v0  ;;  %v1925_v63 = vld [vmem:[#allocation2 + $0x70] sm:$0xff] }
 0x657   : > { %2260 = vmatprep.subr.mxu0 %v4671_v47  ;;  %2331 = vmatprep.subr.mxu1 %v4672_v1 }
 0x658   : > { %2261 = vmatpush1.msra.mxu0 %v4673_v22  ;;  %2332 = vmatpush1.msra.mxu1 %v4674_v5 }
 0x659   : > { %2262 = vmatprep.subr.mxu0 %v4675_v6  ;;  %2333 = vmatprep.subr.mxu1 %v4676_v26 }
 0x65a   : > { %2263 = vmatpush1.msra.mxu0 %v4677_v2  ;;  %2296 = vmatprep.mubr.f32.mxu0 %v4678_v9 }
 0x65b   : > { %2334 = vmatpush1.msra.mxu1 %v4679_v3  ;;  %2367 = vmatprep.mubr.f32.mxu1 %v4678_v9 }
 0x65c   : > { %2473 = vmatprep.subr.mxu0 %v4680_v7  ;;  %2544 = vmatprep.subr.mxu1 %v4681_v30 }
 0x6fb   : > { %v2057_v18 = vpop.f32.mrf.mxu0  ;;  %v2128_v43 = vpop.f32.mrf.mxu1 }
 0x6fc   : > { %v2133_v4 = vadd.f32 %v2057_v18, %v1923_v42  ;;  %v2135_v6 = vadd.f32 %v2128_v43, %v1925_v63 }
 0x6fd   : > { %v2059_v8 = vpop.f32.mrf.mxu0  ;;  %v2130_v58 = vpop.f32.mrf.mxu1 }
 0x6fe   : > { %v2832_v45 = vmul.f32 -1.442695, %v2133_v4  ;;  %v2134_v51 = vadd.f32 %v2059_v8, %v1924_v55  ;;  %v2136_v60 = vadd.f32 %v2130_v58, %v1926_v50 }
 0x700   : > { %2978 = vpow2.f32 %v2832_v45  ;;  %v2833_v49 = vmul.f32 -1.442695, %v2134_v51  ;;  %v2834_v47 = vmul.f32 -1.442695, %v2136_v60 }
 0x702   : > { %2980 = vpow2.f32 %v2833_v49 }
 0x703   : > { %2982 = vpow2.f32 %v2834_v47 }
 0x70d   : > { %v2979_v22 = vpop.eup %2978 }
 0x70e   : > { %v2140_v2 = vadd.f32 1.0, %v2979_v22 }
 0x70f   : > { %v2981_v7 = vpop.eup %2980 }
 0x710   : > { %2984 = vrcp.f32 %v2140_v2  ;;  %v2146_v30 = vadd.f32 1.0, %v2981_v7  ;;  %v2983_v42 = vpop.eup %2982  ;;  %v2406_v7 = vld [vmem:[#allocation2 + $0xf8] sm:$0xff] }
 0x711   : > { %2986 = vtanh.f32 %v2135_v6  ;;  %v2153_v8 = vadd.f32 1.0, %v2983_v42  ;;  %v2405_v6 = vld [vmem:[#allocation2 + $0xa0] sm:$0xff] }
 0x712   : > { %2988 = vrcp.f32 %v2146_v30 }
 0x713   : > { %2990 = vrcp.f32 %v2153_v8 }
 0x71d   : > { %v2985_v18 = vpop.eup %2984 }
 0x71e   : > { %v2987_v55 = vpop.eup %2986 }
 0x71f   : > { %v2989_v4 = vpop.eup %2988  ;;  %v2157_v45 = vmul.f32 %v2987_v55, %v2985_v18 }
 0x720   : > { %v2156_v51 = vmul.f32 %v2989_v4, %v4269_v32  ;;  %v2991_v43 = vpop.eup %2990 }
 0x722   : > { %v4342_v49 = vadd.f32 %v2157_v45, %v2156_v51  ;;  %v2408_v45 = vld [vmem:[#allocation2 + $0x98] sm:$0xff] }
 0x724   : > { %2992 = vtanh.f32 %v4342_v49 }
 0x731   : > { %v2993_v50 = vpop.eup %2992 }
 0x732   : > { %v2160_v58 = vmul.f32 %v2993_v50, %v2991_v43  ;;  %v2407_v43 = vld [vmem:[#allocation2 + $0x20] sm:$0xff] }
 0x734   : > { %2835 = vst [vmem:[%s4499_s4 + $0x28] sm:$0xff] %v2160_v58  ;;  %2297 = vmatmul.mubr.f32.vlgmr.msra.gmra.mxu0 %v2160_v58  ;;  %2368 = vmatmul.mubr.f32.vlgmr.msra.gmra.mxu1 %v2160_v58 }
 0x735   : > { %2474 = vmatpush1.msra.mxu0 %v4003_v44  ;;  %2545 = vmatpush1.msra.mxu1 %v4006_v40  ;;  %v2445_v44 = vld [vmem:[%s3219_s19 + $0x120] sm:$0xff]  ;;  %v2442_v40 = vld [vmem:[%s3219_s19 + $0x108] sm:$0xff] }
 0x736   : > { %2475 = vmatprep.subr.mxu0 %v4011_v46  ;;  %2546 = vmatprep.subr.mxu1 %v4014_v38  ;;  %v2441_v46 = vld [vmem:[%s3219_s19 + $0x100] sm:$0xff]  ;;  %v2438_v38 = vld [vmem:[%s3219_s19 + $0xe8] sm:$0xff] }
 0x737   : > { %2476 = vmatpush1.msra.mxu0 %v4019_v52  ;;  %2547 = vmatpush1.msra.mxu1 %v4022_v53  ;;  %v2437_v52 = vld [vmem:[%s3219_s19 + $0xe0] sm:$0xff]  ;;  %v2434_v53 = vld [vmem:[%s3219_s19 + $0xc8] sm:$0xff] }
 0x738   : > { %2477 = vmatprep.subr.mxu0 %v4027_v54  ;;  %2548 = vmatprep.subr.mxu1 %v4030_v34  ;;  %v2433_v54 = vld [vmem:[%s3219_s19 + $0xc0] sm:$0xff]  ;;  %v2430_v34 = vld [vmem:[%s3219_s19 + $0xa8] sm:$0xff] }
 0x739   : > { %2478 = vmatpush1.msra.mxu0 %v4035_v36  ;;  %2549 = vmatpush1.msra.mxu1 %v4038_v48  ;;  %v2429_v36 = vld [vmem:[%s3219_s19 + $0xa0] sm:$0xff]  ;;  %v2426_v48 = vld [vmem:[%s3219_s19 + $0x88] sm:$0xff] }
 0x73a   : > { %2479 = vmatprep.subr.mxu0 %v4043_v10  ;;  %2550 = vmatprep.subr.mxu1 %v4046_v14  ;;  %v2425_v10 = vld [vmem:[%s3219_s19 + $0x80] sm:$0xff]  ;;  %v2422_v14 = vld [vmem:[%s3219_s19 + $0x68] sm:$0xff] }
 0x73b   : > { %2480 = vmatpush1.msra.mxu0 %v4051_v11  ;;  %2551 = vmatpush1.msra.mxu1 %v4054_v13  ;;  %v2421_v11 = vld [vmem:[%s3219_s19 + $0x60] sm:$0xff]  ;;  %v2418_v13 = vld [vmem:[%s3219_s19 + $0x48] sm:$0xff] }
 0x73c   : > { %2481 = vmatprep.subr.mxu0 %v4059_v15  ;;  %2552 = vmatprep.subr.mxu1 %v4062_v17  ;;  %v2417_v15 = vld [vmem:[%s3219_s19 + $0x40] sm:$0xff]  ;;  %v2414_v17 = vld [vmem:[%s3219_s19 + $0x28] sm:$0xff] }
 0x73d   : > { %2482 = vmatpush1.msra.mxu0 %v4067_v19  ;;  %2553 = vmatpush1.msra.mxu1 %v4070_v21  ;;  %v2413_v19 = vld [vmem:[%s3219_s19 + $0x20] sm:$0xff]  ;;  %v2410_v21 = vld [vmem:[%s3219_s19 + $0x8] sm:$0xff] }
 0x73e   : > { %2483 = vmatprep.subr.mxu0 %v4075_v23  ;;  %2554 = vmatprep.subr.mxu1 %v4078_v25  ;;  %v2409_v23 = vld [vmem:[%s3219_s19] sm:$0xff]  ;;  %v2164_v25 = vld [vmem:[#allocation2 + $0xa8] sm:$0xff] }
 0x73f   : > { %2484 = vmatpush1.msra.mxu0 %v4083_v27  ;;  %2555 = vmatpush1.msra.mxu1 %v4086_v29  ;;  %v2165_v29 = vld [vmem:[#allocation2 + $0xd0] sm:$0xff] }
 0x740   : > { %2485 = vmatprep.subr.mxu0 %v4091_v31  ;;  %2556 = vmatprep.subr.mxu1 %v4094_v33 }
 0x741   : > { %2557 = vmatpush1.msra.mxu1 %v4099_v35  ;;  %2537 = vmatprep.mubr.f32.mxu0 %v4678_v9 }
 0x742   : > { %2558 = vmatprep.subr.mxu1 %v4104_v37  ;;  %2608 = vmatprep.mubr.f32.mxu1 %v4678_v9 }
 0x743   : > { %2559 = vmatpush1.msra.mxu1 %v4107_v39  ;;  %2486 = vmatpush1.msra.mxu0 %v2445_v44 }
 0x744   : > { %2560 = vmatprep.subr.mxu1 %v4110_v41  ;;  %2487 = vmatprep.subr.mxu0 %v2442_v40 }
 0x745   : > { %2561 = vmatpush1.msra.mxu1 %v4115_v61  ;;  %2488 = vmatpush1.msra.mxu0 %v2441_v46  ;;  %v2167_v61 = vld [vmem:[#allocation2 + $0x28] sm:$0xff] }
 0x746   : > { %2562 = vmatprep.subr.mxu1 %v4120_v12  ;;  %2489 = vmatprep.subr.mxu0 %v2438_v38 }
 0x747   : > { %2563 = vmatpush1.msra.mxu1 %v4125_v16  ;;  %2490 = vmatpush1.msra.mxu0 %v2437_v52 }
 0x748   : > { %2564 = vmatprep.subr.mxu1 %v4130_v20  ;;  %2491 = vmatprep.subr.mxu0 %v2434_v53  ;;  %v2166_v20 = vld [vmem:[#allocation2 + $0x10] sm:$0xff] }
 0x749   : > { %2565 = vmatpush1.msra.mxu1 %v4135_v24  ;;  %2492 = vmatpush1.msra.mxu0 %v2433_v54 }
 0x74a   : > { %2566 = vmatprep.subr.mxu1 %v4140_v28  ;;  %2493 = vmatprep.subr.mxu0 %v2430_v34 }
 0x74b   : > { %2567 = vmatpush1.msra.mxu1 %v4662_v56  ;;  %2494 = vmatpush1.msra.mxu0 %v2429_v36 }
 0x74c   : > { %2568 = vmatprep.subr.mxu1 %v4664_v57  ;;  %2495 = vmatprep.subr.mxu0 %v2426_v48 }
 0x74d   : > { %2569 = vmatpush1.msra.mxu1 %v4666_v59  ;;  %2496 = vmatpush1.msra.mxu0 %v2425_v10 }
 0x74e   : > { %2570 = vmatprep.subr.mxu1 %v4668_v62  ;;  %2497 = vmatprep.subr.mxu0 %v2422_v14 }
 0x74f   : > { %2571 = vmatpush1.msra.mxu1 %v4670_v0  ;;  %2498 = vmatpush1.msra.mxu0 %v2421_v11 }
 0x750   : > { %2572 = vmatprep.subr.mxu1 %v4672_v1  ;;  %2499 = vmatprep.subr.mxu0 %v2418_v13 }
 0x751   : > { %2573 = vmatpush1.msra.mxu1 %v4674_v5  ;;  %2500 = vmatpush1.msra.mxu0 %v2417_v15 }
 0x752   : > { %2574 = vmatprep.subr.mxu1 %v4676_v26  ;;  %2501 = vmatprep.subr.mxu0 %v2414_v17 }
 0x753   : > { %2575 = vmatpush1.msra.mxu1 %v4679_v3  ;;  %2502 = vmatpush1.msra.mxu0 %v2413_v19 }
 0x754   : > { %2503 = vmatprep.subr.mxu0 %v2410_v21 }
 0x755   : > { %2504 = vmatpush1.msra.mxu0 %v2409_v23 }
 0x7f4   : > { %v2298_v27 = vpop.f32.mrf.mxu0  ;;  %v2369_v39 = vpop.f32.mrf.mxu1 }
 0x7f5   : > { %v2374_v31 = vadd.f32 %v2298_v27, %v2164_v25  ;;  %v2376_v32 = vadd.f32 %v2369_v39, %v2166_v20 }
 0x7f6   : > { %v2300_v33 = vpop.f32.mrf.mxu0  ;;  %v2371_v12 = vpop.f32.mrf.mxu1 }
 0x7f7   : > { %v2836_v35 = vmul.f32 -1.442695, %v2374_v31  ;;  %v2375_v37 = vadd.f32 %v2300_v33, %v2165_v29  ;;  %v2377_v16 = vadd.f32 %v2371_v12, %v2167_v61 }
 0x7f9   : > { %2994 = vpow2.f32 %v2836_v35  ;;  %v2837_v41 = vmul.f32 -1.442695, %v2375_v37  ;;  %v2838_v24 = vmul.f32 -1.442695, %v2377_v16 }
 0x7fb   : > { %2996 = vpow2.f32 %v2837_v41 }
 0x7fc   : > { %2998 = vpow2.f32 %v2838_v24 }
 0x806   : > { %v2995_v28 = vpop.eup %2994 }
 0x807   : > { %v2381_v56 = vadd.f32 1.0, %v2995_v28 }
 0x808   : > { %v2997_v57 = vpop.eup %2996 }
 0x809   : > { %3000 = vrcp.f32 %v2381_v56  ;;  %v2387_v59 = vadd.f32 1.0, %v2997_v57  ;;  %v2999_v62 = vpop.eup %2998 }
 0x80a   : > { %3002 = vtanh.f32 %v2376_v32  ;;  %v2394_v26 = vadd.f32 1.0, %v2999_v62 }
 0x80b   : > { %3004 = vrcp.f32 %v2387_v59 }
 0x80c   : > { %3006 = vrcp.f32 %v2394_v26 }
 0x816   : > { %v3001_v0 = vpop.eup %3000 }
 0x817   : > { %v3003_v1 = vpop.eup %3002 }
 0x818   : > { %v3005_v5 = vpop.eup %3004  ;;  %v2398_v9 = vmul.f32 %v3003_v1, %v3001_v0 }
 0x819   : > { %v2397_v3 = vmul.f32 %v3005_v5, %v4342_v49  ;;  %v3007_v63 = vpop.eup %3006 }
 0x81b   : > { %v2399_v60 = vadd.f32 %v2398_v9, %v2397_v3 }
 0x81d   : > { %3008 = vtanh.f32 %v2399_v60 }
 0x82a   : > { %v3009_v47 = vpop.eup %3008 }
 0x82b   : > { %v2401_v22 = vmul.f32 %v3009_v47, %v3007_v63 }
 0x82d   : > { %2839 = vst [vmem:[%s4499_s4 + $0x30] sm:$0xff] %v2401_v22  ;;  %2538 = vmatmul.mubr.f32.vlgmr.msra.gmra.mxu0 %v2401_v22  ;;  %2609 = vmatmul.mubr.f32.vlgmr.msra.gmra.mxu1 %v2401_v22 }
 0x8ed   : > { %v2539_v2 = vpop.f32.mrf.mxu0  ;;  %v2610_v4 = vpop.f32.mrf.mxu1 }
 0x8ee   : > { %v2615_v30 = vadd.f32 %v2539_v2, %v2405_v6  ;;  %v2617_v44 = vadd.f32 %v2610_v4, %v2407_v43 }
 0x8ef   : > { %v2541_v42 = vpop.f32.mrf.mxu0  ;;  %v2612_v51 = vpop.f32.mrf.mxu1 }
 0x8f0   : > { %v2840_v18 = vmul.f32 -1.442695, %v2615_v30  ;;  %v2616_v55 = vadd.f32 %v2541_v42, %v2406_v7  ;;  %v2618_v49 = vadd.f32 %v2612_v51, %v2408_v45 }
 0x8f2   : > { %3010 = vpow2.f32 %v2840_v18  ;;  %v2841_v8 = vmul.f32 -1.442695, %v2616_v55  ;;  %v2842_v50 = vmul.f32 -1.442695, %v2618_v49 }
 0x8f4   : > { %3012 = vpow2.f32 %v2841_v8 }
 0x8f5   : > { %3014 = vpow2.f32 %v2842_v50 }
 0x8ff   : > { %v3011_v58 = vpop.eup %3010 }
 0x900   : > { %v2622_v40 = vadd.f32 1.0, %v3011_v58 }
 0x901   : > { %v3013_v46 = vpop.eup %3012 }
 0x902   : > { %3016 = vrcp.f32 %v2622_v40  ;;  %v2628_v38 = vadd.f32 1.0, %v3013_v46  ;;  %v3015_v52 = vpop.eup %3014 }
 0x903   : > { %3018 = vtanh.f32 %v2617_v44  ;;  %v2635_v36 = vadd.f32 1.0, %v3015_v52 }
 0x904   : > { %3020 = vrcp.f32 %v2628_v38 }
 0x905   : > { %3022 = vrcp.f32 %v2635_v36 }
 0x90f   : > { %v3017_v53 = vpop.eup %3016 }
 0x910   : > { %v3019_v54 = vpop.eup %3018 }
 0x911   : > { %v3021_v34 = vpop.eup %3020  ;;  %v2639_v48 = vmul.f32 %v3019_v54, %v3017_v53 }
 0x912   : > { %v2638_v10 = vmul.f32 %v3021_v34, %v2399_v60 }
 0x914   : > { %v2640_v14 = vadd.f32 %v2639_v48, %v2638_v10 }
 0x916   : > { %3024 = vtanh.f32 %v2640_v14  ;;  %2646 = vst [vmem:[%s3228_s30] sm:$0xff] %v2640_v14 }
 0x917   : > { %3039 = shalt.err (!%p3036_p7)
}
 0x918   : > { %s3040_s30 = scalar_lea.hbm %s4423_s15, 128  ;;  %s3044_s28 = scalar_lea.hbm %s4501_s6, 384 }
 0x919   : > { %p3041_p8 = scmp.ne.s32.totalorder %s4423_s15, %s3040_s30  ;;  %p3045_p11 = scmp.lt.s32.totalorder %s4423_s15, %s4501_s6 }
 0x91a   : > { %p3046_p12 = scmp.lt.s32.totalorder %s3044_s28, %s3040_s30 }
 0x91b   : > { %p3042_p9 = pnand %p3041_p8, %p3195_p5 }
 0x91c   : > { %p3047_p13 = por %p3046_p12, %p3045_p11 }
 0x91d   : > { %p3043_p10 = pneg %p3042_p9 }
 0x91f   : > { %p3048_p0 = pnand %p3047_p13, %p3043_p10 }
 0x921   : > { %3051 = shalt.err (!%p3048_p0)
}
 0x922   : > { %2853 = dma.vmem_to_hbm [thread:$0]  (%p3195_p5), %s4425_s26, 128, %s4423_s15, %s2653_s17   ;;  %v3023_v11 = vpop.eup %3022 }
 0x923   : > { %s2669_s12 = sshll.u32 %s3226_s29, 4  ;;  %v3025_v13 = vpop.eup %3024  ;;  %s4455_s13 = scalar_lea.hbm %s4500_s5, %s2846_s20  ;;  %s2670_s12 = int_to_ptr.vmem [resolvable:$true] %s2669_s12 }
 0x924   : > { %v2642_v15 = vmul.f32 %v3025_v13, %v3023_v11  ;;  %s2648_s19 = scalar_lea.sflag [#allocation4], %s3206_s9  ;;  %s3052_s28 = scalar_lea.vmem %s2670_s12, 128 }
 0x925   : > { %p3053_p1 = scmp.ne.s32.totalorder %s2670_s12, %s3052_s28  ;;  %s3121_s26 = smov [#allocation3]  }
 0x926   : > { %2843 = vst [vmem:[%s4499_s4 + $0x38] sm:$0xff] %v2642_v15  ;;  %2645 = vst [vmem:[%s3226_s29] sm:$0xff] %v2642_v15  ;;  %s3056_s15 = sshll.u32 %s3121_s26, 4  ;;  %s3057_s15 = int_to_ptr.vmem [resolvable:$false] %s3056_s15 }
 0x927   : > { %p3054_p2 = pnand %p3053_p1, %p3195_p5  ;;  %s3058_s25 = scalar_lea.vmem %s3057_s15, 256 }
 0x928   : > { %p3059_p4 = scmp.lt.s32.totalorder %s2670_s12, %s3057_s15  ;;  %p3060_p7 = scmp.lt.s32.totalorder %s3058_s25, %s3052_s28 }
 0x929   : > { %p3055_p3 = pneg %p3054_p2 }
 0x92a   : > { %p3061_p8 = por %p3060_p7, %p3059_p4 }
 0x92c   : > { %p3062_p9 = pnand %p3061_p8, %p3055_p3 }
 0x92e   : > { %3065 = shalt.err (!%p3062_p9)
}
 0x92f   : > { %s3066_s29 = scalar_lea.hbm %s4455_s13, 128  ;;  %s3070_s17 = scalar_lea.hbm %s4500_s5, 384 }
 0x930   : > { %p3067_p10 = scmp.ne.s32.totalorder %s4455_s13, %s3066_s29  ;;  %p3071_p13 = scmp.lt.s32.totalorder %s4455_s13, %s4500_s5 }
 0x931   : > { %p3072_p0 = scmp.lt.s32.totalorder %s3070_s17, %s3066_s29 }
 0x932   : > { %p3068_p11 = pnand %p3067_p10, %p3195_p5 }
 0x933   : > { %p3073_p1 = por %p3072_p0, %p3071_p13 }
 0x934   : > { %p3069_p12 = pneg %p3068_p11 }
 0x936   : > { %p3074_p2 = pnand %p3073_p1, %p3069_p12 }
 0x938   : > { %3077 = shalt.err (!%p3074_p2)
}
 0x939   : > { %2852 = dma.vmem_to_hbm [thread:$0]  (%p3195_p5), %s2670_s12, 128, %s4455_s13, %s2648_s19  }
 0x93a PF: > { %p2863_p3 = scmp.ge.s32.totalorder %s3116_s24, 2  ;;  %s2697_s18 = sand.u32 1, %s3104_s21  }
 0x93b   : > { %s2698_s10 = scalar_lea.sflag [#allocation4], %s2697_s18 }
 0x93c   : > { %p2857_p4 = pnand %p2863_p3, %p3199_p6 }
 0x93e   : > { %p2858_p7 = pneg %p2857_p4 }
 0x940   : > { %3095 = dma.done.wait (%p2858_p7), %s2698_s10, 128  }
 0x941   : > { %3097 = vsyncadd (%p2858_p7), %s2698_s10, 4294967168  ;;  %s2707_s30 = scalar_lea.sflag [#allocation6], %s2697_s18 }
 0x942   : > { %3099 = dma.done.wait (%p2858_p7), %s2707_s30, 128  }
 0x943   : > { %3101 = vsyncadd (%p2858_p7), %s2707_s30, 4294967168  ;;  %s4682_s7 = sld [smem:[#allocation9_spill]]  ;;  %p20_p5 = scmp.ge.s32.totalorder %s3182_s27, 5  }
 0x944   : > { %s4683_s21 = smov %s3108_s22  ;;  %s4684_s22 = smov %s3112_s23 }
 0x945   : > { %s4686_s24 = smov %s3182_s27  ;;  %22 = sbr.rel (!%p20_p5) target bundleno = 5 (0x5), region = 124 }
 0x949   : > { %s4685_s23 = smov %s4682_s7 }
 0x94a   :  { %2712 = vsyncpa [#allocation4], 1 }
 0x94b   :  { %2714 = vsyncpa [#allocation4 + $0x1], 1 }
 0x94c   :  { %2715 = vsyncpa [#allocation6], 1 }
 0x94d   :  { %2717 = vsyncpa [#allocation6 + $0x1], 1 }

</bundles_post_ra>
